<compile_context>
chip_gen: v6e
topology: v6e:2x2x1
jax: 0.10.0
libtpu: 0.0.40
codegen_flags: <defaults>
</compile_context>

<pallas_src>
import functools

import jax
import jax.numpy as jnp
import numpy as np
from jax.experimental import pallas as pl
from jax.experimental.pallas import tpu as pltpu

EPS = 1e-5          # nn.LayerNorm default
_LANE = 128
_SUBLANE = 8


def _round_up(x, m):
    return ((x + m - 1) // m) * m


def _erf_approx(x):
    # Abramowitz & Stegun 7.1.26, |error| <= 1.5e-7 — exact-GELU semantics within
    # f32 noise, built only from ops guaranteed to lower in Mosaic (exp/abs/where).
    p = 0.3275911
    a1, a2, a3, a4, a5 = (0.254829592, -0.284496736, 1.421413741,
                          -1.453152027, 1.061405429)
    ax = jnp.abs(x)
    t = 1.0 / (1.0 + p * ax)
    poly = ((((a5 * t + a4) * t + a3) * t + a2) * t + a1) * t
    y = 1.0 - poly * jnp.exp(-(ax * ax))
    return jnp.where(x < 0.0, -y, y)


def _gelu_exact(x):
    # nn.GELU() default (approximate='none'): 0.5*x*(1+erf(x/sqrt(2)))
    return 0.5 * x * (1.0 + _erf_approx(x * 0.7071067811865476))


# ----------------------------------------------------------------------------
# Kernel 1: fused [LN?] -> Linear -> [bias?] -> [GELU?] -> [+res?]
# ----------------------------------------------------------------------------
def _build_linear_kernel(has_ln, has_bias, has_res, gelu, d_in):
    inv_d = 1.0 / d_in

    def kernel(*refs):
        it = iter(refs)
        x_ref = next(it)
        if has_ln:
            g_ref = next(it)
            be_ref = next(it)
        w_ref = next(it)
        if has_bias:
            wb_ref = next(it)
        if has_res:
            r_ref = next(it)
        o_ref = next(it)

        x = x_ref[...]
        if has_ln:
            xf = x.astype(jnp.float32)
            mean = jnp.sum(xf, axis=-1, keepdims=True) * inv_d
            c = xf - mean
            var = jnp.sum(c * c, axis=-1, keepdims=True) * inv_d
            y = (c * jax.lax.rsqrt(var + EPS)) * g_ref[...] + be_ref[...]
            y = y.astype(w_ref.dtype)
        else:
            y = x.astype(w_ref.dtype)

        # Matmul in the weight's native dtype, f32 accumulation on the MXU.
        out = jnp.dot(y, w_ref[...], preferred_element_type=jnp.float32)
        if has_bias:
            out = out + wb_ref[...]
        if gelu:
            out = _gelu_exact(out)
        if has_res:
            out = out + r_ref[...].astype(jnp.float32)
        o_ref[...] = out.astype(o_ref.dtype)

    return kernel


def fused_linear(x, w, b=None, *, gamma=None, beta=None, residual=None,
                 gelu=False, tile_rows=256, out_dtype=None):
    """x: (..., D) -> (..., D_out).  Optional pre-LayerNorm, bias, GELU, residual."""
    *lead, D = x.shape
    D_out = w.shape[1]
    R = int(np.prod(lead)) if lead else 1
    out_dtype = out_dtype or x.dtype

    x2 = x.reshape(R, D)
    # Large row tiles (256 default); pad ragged rows instead of asserting.
    tr = int(min(tile_rows, _round_up(R, _SUBLANE)))
    R_pad = _round_up(R, tr)
    if R_pad != R:
        x2 = jnp.pad(x2, ((0, R_pad - R), (0, 0)))

    # Lane-dense output slab: pad D_out to a multiple of 128 (zero columns).
    Dp = _round_up(D_out, _LANE)
    if Dp != D_out:
        w = jnp.pad(w, ((0, 0), (0, Dp - D_out)))
        if b is not None:
            b = jnp.pad(b, (0, Dp - D_out))

    has_ln = gamma is not None
    has_bias = b is not None
    has_res = residual is not None

    args = [x2]
    in_specs = [pl.BlockSpec((tr, D), lambda i: (i, 0))]
    if has_ln:
        args += [gamma.reshape(1, D).astype(jnp.float32),
                 beta.reshape(1, D).astype(jnp.float32)]
        in_specs += [pl.BlockSpec((1, D), lambda i: (0, 0)),
                     pl.BlockSpec((1, D), lambda i: (0, 0))]
    args.append(w)
    in_specs.append(pl.BlockSpec((D, Dp), lambda i: (0, 0)))
    if has_bias:
        args.append(b.reshape(1, Dp).astype(jnp.float32))
        in_specs.append(pl.BlockSpec((1, Dp), lambda i: (0, 0)))
    if has_res:
        r2 = residual.reshape(R, D_out)
        if R_pad != R:
            r2 = jnp.pad(r2, ((0, R_pad - R), (0, 0)))
        if Dp != D_out:
            r2 = jnp.pad(r2, ((0, 0), (0, Dp - D_out)))
        args.append(r2)
        in_specs.append(pl.BlockSpec((tr, Dp), lambda i: (i, 0)))

    kernel = _build_linear_kernel(has_ln, has_bias, has_res, gelu, D)

    out2 = pl.pallas_call(
        kernel,
        out_shape=jax.ShapeDtypeStruct((R_pad, Dp), out_dtype),
        grid_spec=pltpu.PrefetchScalarGridSpec(
            num_scalar_prefetch=0,
            grid=(R_pad // tr,),
            in_specs=in_specs,
            out_specs=pl.BlockSpec((tr, Dp), lambda i: (i, 0)),
        ),
        compiler_params=pltpu.CompilerParams(
            dimension_semantics=("parallel",)),
        cost_estimate=pl.CostEstimate(
            flops=int(2 * R_pad * D * Dp),
            transcendentals=int(R_pad * Dp if gelu else 0),
            bytes_accessed=int(4 * (R_pad * D + D * Dp + R_pad * Dp
                                    + (R_pad * Dp if has_res else 0)))),
    )(*args)

    return out2[:R, :D_out].reshape(*lead, D_out)


# ----------------------------------------------------------------------------
# Kernel 2: per-(batch*head) attention core
# ----------------------------------------------------------------------------
def _attn_kernel(q_ref, k_ref, v_ref, o_ref, *, scale):
    q = q_ref[0].astype(jnp.float32)          # (N, Dh)
    k = k_ref[0].astype(jnp.float32)          # (M, Dh)
    v = v_ref[0].astype(jnp.float32)          # (M, Dh)
    dots = jnp.dot(q, k.T, preferred_element_type=jnp.float32) * scale
    m = jnp.max(dots, axis=-1, keepdims=True)
    e = jnp.exp(dots - m)
    denom = jnp.sum(e, axis=-1, keepdims=True)
    attn = e / denom
    out = jnp.dot(attn, v, preferred_element_type=jnp.float32)
    o_ref[0] = out.astype(o_ref.dtype)


def attention(q, k, v, *, scale):
    """q: (BH, N, Dh), k/v: (BH, M, Dh) -> (BH, N, Dh)."""
    BH, N, Dh = q.shape
    M = k.shape[1]
    return pl.pallas_call(
        functools.partial(_attn_kernel, scale=scale),
        out_shape=jax.ShapeDtypeStruct((BH, N, Dh), q.dtype),
        grid_spec=pltpu.PrefetchScalarGridSpec(
            num_scalar_prefetch=0,
            grid=(BH,),
            in_specs=[pl.BlockSpec((1, N, Dh), lambda i: (i, 0, 0)),
                      pl.BlockSpec((1, M, Dh), lambda i: (i, 0, 0)),
                      pl.BlockSpec((1, M, Dh), lambda i: (i, 0, 0))],
            out_specs=pl.BlockSpec((1, N, Dh), lambda i: (i, 0, 0)),
        ),
        compiler_params=pltpu.CompilerParams(
            dimension_semantics=("parallel",)),
        cost_estimate=pl.CostEstimate(
            flops=int(4 * BH * N * M * Dh),
            transcendentals=int(BH * N * M),
            bytes_accessed=int(4 * BH * (2 * N * Dh + 2 * M * Dh))),
    )(q, k, v)


# ----------------------------------------------------------------------------
# Kernel 3: LayerNorm (+ optional residual)
# ----------------------------------------------------------------------------
def _build_ln_kernel(has_res, d):
    inv_d = 1.0 / d

    def kernel(*refs):
        if has_res:
            x_ref, g_ref, b_ref, r_ref, o_ref = refs
        else:
            x_ref, g_ref, b_ref, o_ref = refs
        x = x_ref[...].astype(jnp.float32)
        mean = jnp.sum(x, axis=-1, keepdims=True) * inv_d
        c = x - mean
        var = jnp.sum(c * c, axis=-1, keepdims=True) * inv_d
        y = (c * jax.lax.rsqrt(var + EPS)) * g_ref[...] + b_ref[...]
        if has_res:
            y = y + r_ref[...].astype(jnp.float32)
        o_ref[...] = y.astype(o_ref.dtype)

    return kernel


def layer_norm(x, gamma, beta, residual=None, *, tile_rows=256):
    *lead, D = x.shape
    R = int(np.prod(lead)) if lead else 1
    x2 = x.reshape(R, D)
    tr = int(min(tile_rows, _round_up(R, _SUBLANE)))
    R_pad = _round_up(R, tr)
    if R_pad != R:
        x2 = jnp.pad(x2, ((0, R_pad - R), (0, 0)))

    has_res = residual is not None
    args = [x2,
            gamma.reshape(1, D).astype(jnp.float32),
            beta.reshape(1, D).astype(jnp.float32)]
    in_specs = [pl.BlockSpec((tr, D), lambda i: (i, 0)),
                pl.BlockSpec((1, D), lambda i: (0, 0)),
                pl.BlockSpec((1, D), lambda i: (0, 0))]
    if has_res:
        r2 = residual.reshape(R, D)
        if R_pad != R:
            r2 = jnp.pad(r2, ((0, R_pad - R), (0, 0)))
        args.append(r2)
        in_specs.append(pl.BlockSpec((tr, D), lambda i: (i, 0)))

    out2 = pl.pallas_call(
        _build_ln_kernel(has_res, D),
        out_shape=jax.ShapeDtypeStruct((R_pad, D), x.dtype),
        grid_spec=pltpu.PrefetchScalarGridSpec(
            num_scalar_prefetch=0,
            grid=(R_pad // tr,),
            in_specs=in_specs,
            out_specs=pl.BlockSpec((tr, D), lambda i: (i, 0)),
        ),
        compiler_params=pltpu.CompilerParams(
            dimension_semantics=("parallel",)),
    )(*args)
    return out2[:R].reshape(*lead, D)


# ----------------------------------------------------------------------------
# Kernel 4: avg + max pooling over the token axis
# ----------------------------------------------------------------------------
def _pool_kernel(x_ref, avg_ref, max_ref, *, inv_n):
    x = x_ref[0].astype(jnp.float32)                    # (N, D)
    avg_ref[0] = (jnp.sum(x, axis=0, keepdims=True) * inv_n).astype(avg_ref.dtype)
    max_ref[0] = jnp.max(x, axis=0, keepdims=True).astype(max_ref.dtype)


def pool_avg_max(x):
    B, N, D = x.shape
    avg, mx = pl.pallas_call(
        functools.partial(_pool_kernel, inv_n=1.0 / N),
        out_shape=(jax.ShapeDtypeStruct((B, 1, D), x.dtype),
                   jax.ShapeDtypeStruct((B, 1, D), x.dtype)),
        grid_spec=pltpu.PrefetchScalarGridSpec(
            num_scalar_prefetch=0,
            grid=(B,),
            in_specs=[pl.BlockSpec((1, N, D), lambda i: (i, 0, 0))],
            out_specs=(pl.BlockSpec((1, 1, D), lambda i: (i, 0, 0)),
                       pl.BlockSpec((1, 1, D), lambda i: (i, 0, 0))),
        ),
        compiler_params=pltpu.CompilerParams(
            dimension_semantics=("parallel",)),
    )(x)
    return avg.reshape(B, D), mx.reshape(B, D)


# ----------------------------------------------------------------------------
# Module forward (Pallas)
# ----------------------------------------------------------------------------
# TODO(synk): nn.Dropout is implemented as identity (inference semantics / p=0.0);
#             training-mode RNG dropout masks are not implemented.
def transformer_block_pallas(x, ctx, p, *, heads, dim_head):
    """Transformer(depth=1) body, WITHOUT the final LayerNorm (applied by caller)."""
    B, N, _ = x.shape
    M = ctx.shape[1]
    inner = heads * dim_head

    # PreNorm(Attention): q from LN(x); k,v from raw context (PreNorm only norms x).
    q = fused_linear(x, p['wq'], gamma=p['ln1_g'], beta=p['ln1_b'])       # (B,N,inner)
    kv = fused_linear(ctx, p['wkv'])                                      # (B,M,2*inner)
    k, v = kv[..., :inner], kv[..., inner:]

    qh = q.reshape(B, N, heads, dim_head).transpose(0, 2, 1, 3).reshape(B * heads, N, dim_head)
    kh = k.reshape(B, M, heads, dim_head).transpose(0, 2, 1, 3).reshape(B * heads, M, dim_head)
    vh = v.reshape(B, M, heads, dim_head).transpose(0, 2, 1, 3).reshape(B * heads, M, dim_head)

    o = attention(qh, kh, vh, scale=dim_head ** -0.5)                     # (B*H,N,Dh)
    o = o.reshape(B, heads, N, dim_head).transpose(0, 2, 1, 3).reshape(B, N, inner)

    x = fused_linear(o, p['wo'], b=p['bo'], residual=x)                   # to_out + res

    # PreNorm(FeedForward): LN -> W1 -> GELU -> W2 (+ residual)
    h = fused_linear(x, p['w1'], b=p['bf1'],
                     gamma=p['ln2_g'], beta=p['ln2_b'], gelu=True)
    x = fused_linear(h, p['w2'], b=p['bf2'], residual=x)
    return x


def cross_transformer_avg_mod(mri_tokens, pet_tokens, layers, *, heads, dim_head):
    for mri_p, pet_p in layers:
        # mri = Transformer(mri, ctx=pet) + mri  (final LN fused with outer residual)
        mri_tokens = layer_norm(
            transformer_block_pallas(mri_tokens, pet_tokens, mri_p,
                                     heads=heads, dim_head=dim_head),
            mri_p['lnf_g'], mri_p['lnf_b'], residual=mri_tokens)
        # pet = Transformer(pet, ctx=UPDATED mri) + pet
        pet_tokens = layer_norm(
            transformer_block_pallas(pet_tokens, mri_tokens, pet_p,
                                     heads=heads, dim_head=dim_head),
            pet_p['lnf_g'], pet_p['lnf_b'], residual=pet_tokens)

    mri_avg, mri_max = pool_avg_max(mri_tokens)
    pet_avg, pet_max = pool_avg_max(pet_tokens)
    cls_token = jnp.concatenate([mri_avg, mri_max, pet_avg, pet_max], axis=1)
    return cls_token, mri_tokens, pet_tokens


# ----------------------------------------------------------------------------
# Pure-JAX reference (mirrors the PyTorch module)
# ----------------------------------------------------------------------------
def _ln_ref(x, g, b):
    m = jnp.mean(x, axis=-1, keepdims=True)
    v = jnp.mean((x - m) ** 2, axis=-1, keepdims=True)
    return (x - m) / jnp.sqrt(v + EPS) * g + b


def _transformer_ref(x, ctx, p, heads, dim_head):
    B, N, _ = x.shape
    M = ctx.shape[1]
    inner = heads * dim_head
    xn = _ln_ref(x, p['ln1_g'], p['ln1_b'])
    q = xn @ p['wq']
    kv = ctx @ p['wkv']
    k, v = kv[..., :inner], kv[..., inner:]
    sh = lambda t, L: t.reshape(B, L, heads, dim_head).transpose(0, 2, 1, 3)
    qh, kh, vh = sh(q, N), sh(k, M), sh(v, M)
    dots = jnp.einsum('bhid,bhjd->bhij', qh, kh) * (dim_head ** -0.5)
    attn = jax.nn.softmax(dots, axis=-1)
    o = jnp.einsum('bhij,bhjd->bhid', attn, vh)
    o = o.transpose(0, 2, 1, 3).reshape(B, N, inner)
    x = o @ p['wo'] + p['bo'] + x
    xn2 = _ln_ref(x, p['ln2_g'], p['ln2_b'])
    h = jax.nn.gelu(xn2 @ p['w1'] + p['bf1'], approximate=False)
    x = h @ p['w2'] + p['bf2'] + x
    return _ln_ref(x, p['lnf_g'], p['lnf_b'])


def cross_transformer_ref(mri, pet, layers, *, heads, dim_head):
    for mp, pp in layers:
        mri = _transformer_ref(mri, pet, mp, heads, dim_head) + mri
        pet = _transformer_ref(pet, mri, pp, heads, dim_head) + pet
    cls = jnp.concatenate([jnp.mean(mri, axis=1), jnp.max(mri, axis=1),
                           jnp.mean(pet, axis=1), jnp.max(pet, axis=1)], axis=1)
    return cls, mri, pet


# ----------------------------------------------------------------------------
# Parameter init + test
# ----------------------------------------------------------------------------
def init_transformer_params(key, dim, heads, dim_head, mlp_dim):
    inner = heads * dim_head
    ks = jax.random.split(key, 14)
    w_init = lambda k, fi, fo: jax.random.normal(k, (fi, fo), jnp.float32) / np.sqrt(fi)
    ln_g = lambda k, d: 1.0 + 0.1 * jax.random.normal(k, (d,), jnp.float32)
    ln_b = lambda k, d: 0.1 * jax.random.normal(k, (d,), jnp.float32)
    return dict(
        ln1_g=ln_g(ks[0], dim), ln1_b=ln_b(ks[1], dim),
        wq=w_init(ks[2], dim, inner),
        wkv=w_init(ks[3], dim, 2 * inner),
        wo=w_init(ks[4], inner, dim),
        bo=0.1 * jax.random.normal(ks[5], (dim,), jnp.float32),
        ln2_g=ln_g(ks[6], dim), ln2_b=ln_b(ks[7], dim),
        w1=w_init(ks[8], dim, mlp_dim),
        bf1=0.1 * jax.random.normal(ks[9], (mlp_dim,), jnp.float32),
        w2=w_init(ks[10], mlp_dim, dim),
        bf2=0.1 * jax.random.normal(ks[11], (dim,), jnp.float32),
        lnf_g=ln_g(ks[12], dim), lnf_b=ln_b(ks[13], dim),
    )


if __name__ == "__main__":
    key = jax.random.PRNGKey(0)
    B, N_MRI, N_PET = 2, 8, 8
    DIM, DEPTH, HEADS, DIM_HEAD, MLP_DIM = 32, 2, 4, 64, 64

    k_mri, k_pet, k_params = jax.random.split(key, 3)
    mri = jax.random.normal(k_mri, (B, N_MRI, DIM), jnp.float32)
    pet = jax.random.normal(k_pet, (B, N_PET, DIM), jnp.float32)

    layer_keys = jax.random.split(k_params, DEPTH * 2)
    layers = [
        (init_transformer_params(layer_keys[2 * i], DIM, HEADS, DIM_HEAD, MLP_DIM),
         init_transformer_params(layer_keys[2 * i + 1], DIM, HEADS, DIM_HEAD, MLP_DIM))
        for i in range(DEPTH)
    ]

    fwd = jax.jit(functools.partial(cross_transformer_avg_mod,
                                    heads=HEADS, dim_head=DIM_HEAD))
    cls_tok, mri_out, pet_out = fwd(mri, pet, layers)
    jax.block_until_ready((cls_tok, mri_out, pet_out))

    cls_ref, mri_ref, pet_ref = cross_transformer_ref(
        mri, pet, layers, heads=HEADS, dim_head=DIM_HEAD)

    assert cls_tok.shape == (B, 4 * DIM)
    assert mri_out.shape == (B, N_MRI, DIM)
    assert pet_out.shape == (B, N_PET, DIM)
    assert jnp.allclose(cls_tok, cls_ref, atol=2e-3, rtol=2e-3)
    assert jnp.allclose(mri_out, mri_ref, atol=2e-3, rtol=2e-3)
    assert jnp.allclose(pet_out, pet_ref, atol=2e-3, rtol=2e-3)

    print("KERNEL_OK")
</pallas_src>

<mosaic_0001>
module attributes {stable_mosaic.version = 11 : i64} {
  func.func @kernel(%arg0: i32, %arg1: memref<16x32xf32, #tpu.memory_space<vmem>>, %arg2: memref<32x512xf32, #tpu.memory_space<vmem>>, %arg3: memref<16x512xf32, #tpu.memory_space<vmem>>) attributes {dimension_semantics = [#tpu.dimension_semantics<parallel>], iteration_bounds = array<i64: 1>, scalar_prefetch = 0 : i64, scratch_operands = 0 : i64, tpu.core_type = #tpu.core_type<tc>, window_params = [{transform_indices = @transform_0, window_bounds = array<i64: 16, 32>}, {pipeline_mode = #tpu.pipeline_mode<synchronous>, transform_indices = @transform_1, window_bounds = array<i64: 32, 512>}, {transform_indices = @transform_2, window_bounds = array<i64: 16, 512>}]} {
    %c0 = arith.constant 0 : index
    %c0_0 = arith.constant 0 : index
    %0 = vector.load %arg1[%c0, %c0_0] : memref<16x32xf32, #tpu.memory_space<vmem>>, vector<16x32xf32>
    %c0_1 = arith.constant 0 : index
    %c0_2 = arith.constant 0 : index
    %1 = vector.load %arg2[%c0_1, %c0_2] : memref<32x512xf32, #tpu.memory_space<vmem>>, vector<32x512xf32>
    %cst = arith.constant dense<0.000000e+00> : vector<16x512xf32>
    %2 = tpu.matmul %0, %1, %cst {dimension_numbers = #tpu.dot_dimension_numbers<[1], [0], [0], [1], [0, 0, 1, 1], [], []>} : vector<16x32xf32>, vector<32x512xf32>, vector<16x512xf32> -> vector<16x512xf32>
    %c0_3 = arith.constant 0 : index
    %c0_4 = arith.constant 0 : index
    %3 = vector.load %arg3[%c0_3, %c0_4] : memref<16x512xf32, #tpu.memory_space<vmem>>, vector<16x512xf32>
    tpu.vector_store %arg3[%c0_3, %c0_4], %2 {strides = array<i32>} : memref<16x512xf32, #tpu.memory_space<vmem>>, vector<16x512xf32>,
    return
  }
  func.func @transform_0(%arg0: i32) -> (i32, i32) {
    %c0_i32 = arith.constant 0 : i32
    %c0_i32_0 = arith.constant 0 : i32
    return %arg0, %c0_i32 : i32, i32
  }
  func.func @transform_1(%arg0: i32) -> (i32, i32) {
    %c0_i32 = arith.constant 0 : i32
    %c0_i32_0 = arith.constant 0 : i32
    %c0_i32_1 = arith.constant 0 : i32
    return %c0_i32, %c0_i32_0 : i32, i32
  }
  func.func @transform_2(%arg0: i32) -> (i32, i32) {
    %c0_i32 = arith.constant 0 : i32
    %c0_i32_0 = arith.constant 0 : i32
    return %arg0, %c0_i32 : i32, i32
  }
}

module attributes {stable_mosaic.version = 11 : i64} {
  func.func @kernel(%arg0: i32, %arg1: memref<16x32xf32, #tpu.memory_space<vmem>>, %arg2: memref<1x32xf32, #tpu.memory_space<vmem>>, %arg3: memref<1x32xf32, #tpu.memory_space<vmem>>, %arg4: memref<32x256xf32, #tpu.memory_space<vmem>>, %arg5: memref<16x256xf32, #tpu.memory_space<vmem>>) attributes {dimension_semantics = [#tpu.dimension_semantics<parallel>], iteration_bounds = array<i64: 1>, scalar_prefetch = 0 : i64, scratch_operands = 0 : i64, tpu.core_type = #tpu.core_type<tc>, window_params = [{transform_indices = @transform_0, window_bounds = array<i64: 16, 32>}, {pipeline_mode = #tpu.pipeline_mode<synchronous>, transform_indices = @transform_1, window_bounds = array<i64: 1, 32>}, {pipeline_mode = #tpu.pipeline_mode<synchronous>, transform_indices = @transform_2, window_bounds = array<i64: 1, 32>}, {pipeline_mode = #tpu.pipeline_mode<synchronous>, transform_indices = @transform_3, window_bounds = array<i64: 32, 256>}, {transform_indices = @transform_4, window_bounds = array<i64: 16, 256>}]} {
    %c0 = arith.constant 0 : index
    %c0_0 = arith.constant 0 : index
    %0 = vector.load %arg1[%c0, %c0_0] : memref<16x32xf32, #tpu.memory_space<vmem>>, vector<16x32xf32>
    %cst = arith.constant dense<0.000000e+00> : vector<16xf32>
    %1 = vector.multi_reduction <add>, %0, %cst [1] : vector<16x32xf32> to vector<16xf32>
    %2 = vector.shape_cast %1 : vector<16xf32> to vector<16x1xf32>
    %cst_1 = arith.constant 3.125000e-02 : f32
    %3 = vector.broadcast %cst_1 : f32 to vector<16x1xf32>
    %4 = arith.mulf %2, %3 : vector<16x1xf32>
    %5 = vector.broadcast %4 : vector<16x1xf32> to vector<16x32xf32>
    %6 = arith.subf %0, %5 : vector<16x32xf32>
    %7 = arith.mulf %6, %6 : vector<16x32xf32>
    %cst_2 = arith.constant dense<0.000000e+00> : vector<16xf32>
    %8 = vector.multi_reduction <add>, %7, %cst_2 [1] : vector<16x32xf32> to vector<16xf32>
    %9 = vector.shape_cast %8 : vector<16xf32> to vector<16x1xf32>
    %cst_3 = arith.constant 3.125000e-02 : f32
    %10 = vector.broadcast %cst_3 : f32 to vector<16x1xf32>
    %11 = arith.mulf %9, %10 : vector<16x1xf32>
    %cst_4 = arith.constant 9.99999974E-6 : f32
    %12 = vector.broadcast %cst_4 : f32 to vector<16x1xf32>
    %13 = arith.addf %11, %12 : vector<16x1xf32>
    %14 = math.rsqrt %13 : vector<16x1xf32>
    %15 = vector.broadcast %14 : vector<16x1xf32> to vector<16x32xf32>
    %16 = arith.mulf %6, %15 : vector<16x32xf32>
    %c0_5 = arith.constant 0 : index
    %c0_6 = arith.constant 0 : index
    %17 = vector.load %arg2[%c0_5, %c0_6] : memref<1x32xf32, #tpu.memory_space<vmem>>, vector<1x32xf32>
    %18 = vector.broadcast %17 : vector<1x32xf32> to vector<16x32xf32>
    %19 = arith.mulf %16, %18 : vector<16x32xf32>
    %c0_7 = arith.constant 0 : index
    %c0_8 = arith.constant 0 : index
    %20 = vector.load %arg3[%c0_7, %c0_8] : memref<1x32xf32, #tpu.memory_space<vmem>>, vector<1x32xf32>
    %21 = vector.broadcast %20 : vector<1x32xf32> to vector<16x32xf32>
    %22 = arith.addf %19, %21 : vector<16x32xf32>
    %c0_9 = arith.constant 0 : index
    %c0_10 = arith.constant 0 : index
    %23 = vector.load %arg4[%c0_9, %c0_10] : memref<32x256xf32, #tpu.memory_space<vmem>>, vector<32x256xf32>
    %cst_11 = arith.constant dense<0.000000e+00> : vector<16x256xf32>
    %24 = tpu.matmul %22, %23, %cst_11 {dimension_numbers = #tpu.dot_dimension_numbers<[1], [0], [0], [1], [0, 0, 1, 1], [], []>} : vector<16x32xf32>, vector<32x256xf32>, vector<16x256xf32> -> vector<16x256xf32>
    %c0_12 = arith.constant 0 : index
    %c0_13 = arith.constant 0 : index
    %25 = vector.load %arg5[%c0_12, %c0_13] : memref<16x256xf32, #tpu.memory_space<vmem>>, vector<16x256xf32>
    tpu.vector_store %arg5[%c0_12, %c0_13], %24 {strides = array<i32>} : memref<16x256xf32, #tpu.memory_space<vmem>>, vector<16x256xf32>,
    return
  }
  func.func @transform_0(%arg0: i32) -> (i32, i32) {
    %c0_i32 = arith.constant 0 : i32
    %c0_i32_0 = arith.constant 0 : i32
    return %arg0, %c0_i32 : i32, i32
  }
  func.func @transform_1(%arg0: i32) -> (i32, i32) {
    %c0_i32 = arith.constant 0 : i32
    %c0_i32_0 = arith.constant 0 : i32
    %c0_i32_1 = arith.constant 0 : i32
    return %c0_i32, %c0_i32_0 : i32, i32
  }
  func.func @transform_2(%arg0: i32) -> (i32, i32) {
    %c0_i32 = arith.constant 0 : i32
    %c0_i32_0 = arith.constant 0 : i32
    %c0_i32_1 = arith.constant 0 : i32
    return %c0_i32, %c0_i32_0 : i32, i32
  }
  func.func @transform_3(%arg0: i32) -> (i32, i32) {
    %c0_i32 = arith.constant 0 : i32
    %c0_i32_0 = arith.constant 0 : i32
    %c0_i32_1 = arith.constant 0 : i32
    return %c0_i32, %c0_i32_0 : i32, i32
  }
  func.func @transform_4(%arg0: i32) -> (i32, i32) {
    %c0_i32 = arith.constant 0 : i32
    %c0_i32_0 = arith.constant 0 : i32
    return %arg0, %c0_i32 : i32, i32
  }
}

module attributes {stable_mosaic.version = 11 : i64} {
  func.func @_attn_kernel(%arg0: i32, %arg1: memref<1x8x64xf32, #tpu.memory_space<vmem>>, %arg2: memref<1x8x64xf32, #tpu.memory_space<vmem>>, %arg3: memref<1x8x64xf32, #tpu.memory_space<vmem>>, %arg4: memref<1x8x64xf32, #tpu.memory_space<vmem>>) attributes {dimension_semantics = [#tpu.dimension_semantics<parallel>], iteration_bounds = array<i64: 8>, scalar_prefetch = 0 : i64, scratch_operands = 0 : i64, tpu.core_type = #tpu.core_type<tc>, window_params = [{transform_indices = @transform_0, window_bounds = array<i64: 1, 8, 64>}, {transform_indices = @transform_1, window_bounds = array<i64: 1, 8, 64>}, {transform_indices = @transform_2, window_bounds = array<i64: 1, 8, 64>}, {transform_indices = @transform_3, window_bounds = array<i64: 1, 8, 64>}]} {
    %c0 = arith.constant 0 : index
    %c0_0 = arith.constant 0 : index
    %c0_1 = arith.constant 0 : index
    %0 = vector.load %arg1[%c0, %c0_0, %c0_1] : memref<1x8x64xf32, #tpu.memory_space<vmem>>, vector<1x8x64xf32>
    %1 = vector.shape_cast %0 : vector<1x8x64xf32> to vector<8x64xf32>
    %c0_2 = arith.constant 0 : index
    %c0_3 = arith.constant 0 : index
    %c0_4 = arith.constant 0 : index
    %2 = vector.load %arg2[%c0_2, %c0_3, %c0_4] : memref<1x8x64xf32, #tpu.memory_space<vmem>>, vector<1x8x64xf32>
    %3 = vector.shape_cast %2 : vector<1x8x64xf32> to vector<8x64xf32>
    %c0_5 = arith.constant 0 : index
    %c0_6 = arith.constant 0 : index
    %c0_7 = arith.constant 0 : index
    %4 = vector.load %arg3[%c0_5, %c0_6, %c0_7] : memref<1x8x64xf32, #tpu.memory_space<vmem>>, vector<1x8x64xf32>
    %5 = vector.shape_cast %4 : vector<1x8x64xf32> to vector<8x64xf32>
    %6 = tpu.transpose %3, [1, 0] : vector<8x64xf32> -> vector<64x8xf32>
    %cst = arith.constant dense<0.000000e+00> : vector<8x8xf32>
    %7 = tpu.matmul %1, %6, %cst {dimension_numbers = #tpu.dot_dimension_numbers<[1], [0], [0], [1], [0, 0, 1, 1], [], []>} : vector<8x64xf32>, vector<64x8xf32>, vector<8x8xf32> -> vector<8x8xf32>
    %cst_8 = arith.constant 1.250000e-01 : f32
    %8 = vector.broadcast %cst_8 : f32 to vector<8x8xf32>
    %9 = arith.mulf %7, %8 : vector<8x8xf32>
    %cst_9 = arith.constant dense<0xFF800000> : vector<8xf32>
    %10 = vector.multi_reduction <maximumf>, %9, %cst_9 [1] : vector<8x8xf32> to vector<8xf32>
    %11 = vector.shape_cast %10 : vector<8xf32> to vector<8x1xf32>
    %12 = vector.broadcast %11 : vector<8x1xf32> to vector<8x8xf32>
    %13 = arith.subf %9, %12 : vector<8x8xf32>
    %14 = math.exp %13 : vector<8x8xf32>
    %cst_10 = arith.constant dense<0.000000e+00> : vector<8xf32>
    %15 = vector.multi_reduction <add>, %14, %cst_10 [1] : vector<8x8xf32> to vector<8xf32>
    %16 = vector.shape_cast %15 : vector<8xf32> to vector<8x1xf32>
    %17 = vector.broadcast %16 : vector<8x1xf32> to vector<8x8xf32>
    %18 = arith.divf %14, %17 : vector<8x8xf32>
    %cst_11 = arith.constant dense<0.000000e+00> : vector<8x64xf32>
    %19 = tpu.matmul %18, %5, %cst_11 {dimension_numbers = #tpu.dot_dimension_numbers<[1], [0], [0], [1], [0, 0, 1, 1], [], []>} : vector<8x8xf32>, vector<8x64xf32>, vector<8x64xf32> -> vector<8x64xf32>
    %c0_12 = arith.constant 0 : index
    %c0_13 = arith.constant 0 : index
    %c0_14 = arith.constant 0 : index
    %20 = vector.load %arg4[%c0_12, %c0_13, %c0_14] : memref<1x8x64xf32, #tpu.memory_space<vmem>>, vector<1x8x64xf32>
    %21 = vector.shape_cast %20 : vector<1x8x64xf32> to vector<8x64xf32>
    %22 = vector.shape_cast %19 : vector<8x64xf32> to vector<1x8x64xf32>
    tpu.vector_store %arg4[%c0_12, %c0_13, %c0_14], %22 {strides = array<i32>} : memref<1x8x64xf32, #tpu.memory_space<vmem>>, vector<1x8x64xf32>,
    return
  }
  func.func @transform_0(%arg0: i32) -> (i32, i32, i32) {
    %c0_i32 = arith.constant 0 : i32
    %c0_i32_0 = arith.constant 0 : i32
    %c0_i32_1 = arith.constant 0 : i32
    return %arg0, %c0_i32, %c0_i32_0 : i32, i32, i32
  }
  func.func @transform_1(%arg0: i32) -> (i32, i32, i32) {
    %c0_i32 = arith.constant 0 : i32
    %c0_i32_0 = arith.constant 0 : i32
    %c0_i32_1 = arith.constant 0 : i32
    return %arg0, %c0_i32, %c0_i32_0 : i32, i32, i32
  }
  func.func @transform_2(%arg0: i32) -> (i32, i32, i32) {
    %c0_i32 = arith.constant 0 : i32
    %c0_i32_0 = arith.constant 0 : i32
    %c0_i32_1 = arith.constant 0 : i32
    return %arg0, %c0_i32, %c0_i32_0 : i32, i32, i32
  }
  func.func @transform_3(%arg0: i32) -> (i32, i32, i32) {
    %c0_i32 = arith.constant 0 : i32
    %c0_i32_0 = arith.constant 0 : i32
    %c0_i32_1 = arith.constant 0 : i32
    return %arg0, %c0_i32, %c0_i32_0 : i32, i32, i32
  }
}

module attributes {stable_mosaic.version = 11 : i64} {
  func.func @kernel(%arg0: i32, %arg1: memref<16x256xf32, #tpu.memory_space<vmem>>, %arg2: memref<256x128xf32, #tpu.memory_space<vmem>>, %arg3: memref<1x128xf32, #tpu.memory_space<vmem>>, %arg4: memref<16x128xf32, #tpu.memory_space<vmem>>, %arg5: memref<16x128xf32, #tpu.memory_space<vmem>>) attributes {dimension_semantics = [#tpu.dimension_semantics<parallel>], iteration_bounds = array<i64: 1>, scalar_prefetch = 0 : i64, scratch_operands = 0 : i64, tpu.core_type = #tpu.core_type<tc>, window_params = [{transform_indices = @transform_0, window_bounds = array<i64: 16, 256>}, {pipeline_mode = #tpu.pipeline_mode<synchronous>, transform_indices = @transform_1, window_bounds = array<i64: 256, 128>}, {pipeline_mode = #tpu.pipeline_mode<synchronous>, transform_indices = @transform_2, window_bounds = array<i64: 1, 128>}, {transform_indices = @transform_3, window_bounds = array<i64: 16, 128>}, {transform_indices = @transform_4, window_bounds = array<i64: 16, 128>}]} {
    %c0 = arith.constant 0 : index
    %c0_0 = arith.constant 0 : index
    %0 = vector.load %arg1[%c0, %c0_0] : memref<16x256xf32, #tpu.memory_space<vmem>>, vector<16x256xf32>
    %c0_1 = arith.constant 0 : index
    %c0_2 = arith.constant 0 : index
    %1 = vector.load %arg2[%c0_1, %c0_2] : memref<256x128xf32, #tpu.memory_space<vmem>>, vector<256x128xf32>
    %cst = arith.constant dense<0.000000e+00> : vector<16x128xf32>
    %2 = tpu.matmul %0, %1, %cst {dimension_numbers = #tpu.dot_dimension_numbers<[1], [0], [0], [1], [0, 0, 1, 1], [], []>} : vector<16x256xf32>, vector<256x128xf32>, vector<16x128xf32> -> vector<16x128xf32>
    %c0_3 = arith.constant 0 : index
    %c0_4 = arith.constant 0 : index
    %3 = vector.load %arg3[%c0_3, %c0_4] : memref<1x128xf32, #tpu.memory_space<vmem>>, vector<1x128xf32>
    %4 = vector.broadcast %3 : vector<1x128xf32> to vector<16x128xf32>
    %5 = arith.addf %2, %4 : vector<16x128xf32>
    %c0_5 = arith.constant 0 : index
    %c0_6 = arith.constant 0 : index
    %6 = vector.load %arg4[%c0_5, %c0_6] : memref<16x128xf32, #tpu.memory_space<vmem>>, vector<16x128xf32>
    %7 = arith.addf %5, %6 : vector<16x128xf32>
    %c0_7 = arith.constant 0 : index
    %c0_8 = arith.constant 0 : index
    %8 = vector.load %arg5[%c0_7, %c0_8] : memref<16x128xf32, #tpu.memory_space<vmem>>, vector<16x128xf32>
    tpu.vector_store %arg5[%c0_7, %c0_8], %7 {strides = array<i32>} : memref<16x128xf32, #tpu.memory_space<vmem>>, vector<16x128xf32>,
    return
  }
  func.func @transform_0(%arg0: i32) -> (i32, i32) {
    %c0_i32 = arith.constant 0 : i32
    %c0_i32_0 = arith.constant 0 : i32
    return %arg0, %c0_i32 : i32, i32
  }
  func.func @transform_1(%arg0: i32) -> (i32, i32) {
    %c0_i32 = arith.constant 0 : i32
    %c0_i32_0 = arith.constant 0 : i32
    %c0_i32_1 = arith.constant 0 : i32
    return %c0_i32, %c0_i32_0 : i32, i32
  }
  func.func @transform_2(%arg0: i32) -> (i32, i32) {
    %c0_i32 = arith.constant 0 : i32
    %c0_i32_0 = arith.constant 0 : i32
    %c0_i32_1 = arith.constant 0 : i32
    return %c0_i32, %c0_i32_0 : i32, i32
  }
  func.func @transform_3(%arg0: i32) -> (i32, i32) {
    %c0_i32 = arith.constant 0 : i32
    %c0_i32_0 = arith.constant 0 : i32
    return %arg0, %c0_i32 : i32, i32
  }
  func.func @transform_4(%arg0: i32) -> (i32, i32) {
    %c0_i32 = arith.constant 0 : i32
    %c0_i32_0 = arith.constant 0 : i32
    return %arg0, %c0_i32 : i32, i32
  }
}

module attributes {stable_mosaic.version = 11 : i64} {
  func.func @kernel(%arg0: i32, %arg1: memref<16x32xf32, #tpu.memory_space<vmem>>, %arg2: memref<1x32xf32, #tpu.memory_space<vmem>>, %arg3: memref<1x32xf32, #tpu.memory_space<vmem>>, %arg4: memref<32x128xf32, #tpu.memory_space<vmem>>, %arg5: memref<1x128xf32, #tpu.memory_space<vmem>>, %arg6: memref<16x128xf32, #tpu.memory_space<vmem>>) attributes {dimension_semantics = [#tpu.dimension_semantics<parallel>], iteration_bounds = array<i64: 1>, scalar_prefetch = 0 : i64, scratch_operands = 0 : i64, tpu.core_type = #tpu.core_type<tc>, window_params = [{transform_indices = @transform_0, window_bounds = array<i64: 16, 32>}, {pipeline_mode = #tpu.pipeline_mode<synchronous>, transform_indices = @transform_1, window_bounds = array<i64: 1, 32>}, {pipeline_mode = #tpu.pipeline_mode<synchronous>, transform_indices = @transform_2, window_bounds = array<i64: 1, 32>}, {pipeline_mode = #tpu.pipeline_mode<synchronous>, transform_indices = @transform_3, window_bounds = array<i64: 32, 128>}, {pipeline_mode = #tpu.pipeline_mode<synchronous>, transform_indices = @transform_4, window_bounds = array<i64: 1, 128>}, {transform_indices = @transform_5, window_bounds = array<i64: 16, 128>}]} {
    %c0 = arith.constant 0 : index
    %c0_0 = arith.constant 0 : index
    %0 = vector.load %arg1[%c0, %c0_0] : memref<16x32xf32, #tpu.memory_space<vmem>>, vector<16x32xf32>
    %cst = arith.constant dense<0.000000e+00> : vector<16xf32>
    %1 = vector.multi_reduction <add>, %0, %cst [1] : vector<16x32xf32> to vector<16xf32>
    %2 = vector.shape_cast %1 : vector<16xf32> to vector<16x1xf32>
    %cst_1 = arith.constant 3.125000e-02 : f32
    %3 = vector.broadcast %cst_1 : f32 to vector<16x1xf32>
    %4 = arith.mulf %2, %3 : vector<16x1xf32>
    %5 = vector.broadcast %4 : vector<16x1xf32> to vector<16x32xf32>
    %6 = arith.subf %0, %5 : vector<16x32xf32>
    %7 = arith.mulf %6, %6 : vector<16x32xf32>
    %cst_2 = arith.constant dense<0.000000e+00> : vector<16xf32>
    %8 = vector.multi_reduction <add>, %7, %cst_2 [1] : vector<16x32xf32> to vector<16xf32>
    %9 = vector.shape_cast %8 : vector<16xf32> to vector<16x1xf32>
    %cst_3 = arith.constant 3.125000e-02 : f32
    %10 = vector.broadcast %cst_3 : f32 to vector<16x1xf32>
    %11 = arith.mulf %9, %10 : vector<16x1xf32>
    %cst_4 = arith.constant 9.99999974E-6 : f32
    %12 = vector.broadcast %cst_4 : f32 to vector<16x1xf32>
    %13 = arith.addf %11, %12 : vector<16x1xf32>
    %14 = math.rsqrt %13 : vector<16x1xf32>
    %15 = vector.broadcast %14 : vector<16x1xf32> to vector<16x32xf32>
    %16 = arith.mulf %6, %15 : vector<16x32xf32>
    %c0_5 = arith.constant 0 : index
    %c0_6 = arith.constant 0 : index
    %17 = vector.load %arg2[%c0_5, %c0_6] : memref<1x32xf32, #tpu.memory_space<vmem>>, vector<1x32xf32>
    %18 = vector.broadcast %17 : vector<1x32xf32> to vector<16x32xf32>
    %19 = arith.mulf %16, %18 : vector<16x32xf32>
    %c0_7 = arith.constant 0 : index
    %c0_8 = arith.constant 0 : index
    %20 = vector.load %arg3[%c0_7, %c0_8] : memref<1x32xf32, #tpu.memory_space<vmem>>, vector<1x32xf32>
    %21 = vector.broadcast %20 : vector<1x32xf32> to vector<16x32xf32>
    %22 = arith.addf %19, %21 : vector<16x32xf32>
    %c0_9 = arith.constant 0 : index
    %c0_10 = arith.constant 0 : index
    %23 = vector.load %arg4[%c0_9, %c0_10] : memref<32x128xf32, #tpu.memory_space<vmem>>, vector<32x128xf32>
    %cst_11 = arith.constant dense<0.000000e+00> : vector<16x128xf32>
    %24 = tpu.matmul %22, %23, %cst_11 {dimension_numbers = #tpu.dot_dimension_numbers<[1], [0], [0], [1], [0, 0, 1, 1], [], []>} : vector<16x32xf32>, vector<32x128xf32>, vector<16x128xf32> -> vector<16x128xf32>
    %c0_12 = arith.constant 0 : index
    %c0_13 = arith.constant 0 : index
    %25 = vector.load %arg5[%c0_12, %c0_13] : memref<1x128xf32, #tpu.memory_space<vmem>>, vector<1x128xf32>
    %26 = vector.broadcast %25 : vector<1x128xf32> to vector<16x128xf32>
    %27 = arith.addf %24, %26 : vector<16x128xf32>
    %cst_14 = arith.constant 5.000000e-01 : f32
    %28 = vector.broadcast %cst_14 : f32 to vector<16x128xf32>
    %29 = arith.mulf %28, %27 : vector<16x128xf32>
    %cst_15 = arith.constant 0.707106769 : f32
    %30 = vector.broadcast %cst_15 : f32 to vector<16x128xf32>
    %31 = arith.mulf %27, %30 : vector<16x128xf32>
    %32 = math.absf %31 : vector<16x128xf32>
    %cst_16 = arith.constant 0.327591091 : f32
    %33 = vector.broadcast %cst_16 : f32 to vector<16x128xf32>
    %34 = arith.mulf %33, %32 : vector<16x128xf32>
    %cst_17 = arith.constant 1.000000e+00 : f32
    %35 = vector.broadcast %cst_17 : f32 to vector<16x128xf32>
    %36 = arith.addf %35, %34 : vector<16x128xf32>
    %cst_18 = arith.constant 1.000000e+00 : f32
    %37 = vector.broadcast %cst_18 : f32 to vector<16x128xf32>
    %38 = arith.divf %37, %36 : vector<16x128xf32>
    %cst_19 = arith.constant 1.06140542 : f32
    %39 = vector.broadcast %cst_19 : f32 to vector<16x128xf32>
    %40 = arith.mulf %39, %38 : vector<16x128xf32>
    %cst_20 = arith.constant -1.45315206 : f32
    %41 = vector.broadcast %cst_20 : f32 to vector<16x128xf32>
    %42 = arith.addf %40, %41 : vector<16x128xf32>
    %43 = arith.mulf %42, %38 : vector<16x128xf32>
    %cst_21 = arith.constant 1.42141378 : f32
    %44 = vector.broadcast %cst_21 : f32 to vector<16x128xf32>
    %45 = arith.addf %43, %44 : vector<16x128xf32>
    %46 = arith.mulf %45, %38 : vector<16x128xf32>
    %cst_22 = arith.constant -0.284496725 : f32
    %47 = vector.broadcast %cst_22 : f32 to vector<16x128xf32>
    %48 = arith.addf %46, %47 : vector<16x128xf32>
    %49 = arith.mulf %48, %38 : vector<16x128xf32>
    %cst_23 = arith.constant 0.254829586 : f32
    %50 = vector.broadcast %cst_23 : f32 to vector<16x128xf32>
    %51 = arith.addf %49, %50 : vector<16x128xf32>
    %52 = arith.mulf %51, %38 : vector<16x128xf32>
    %53 = arith.mulf %32, %32 : vector<16x128xf32>
    %cst_24 = arith.constant 0.000000e+00 : f32
    %54 = vector.broadcast %cst_24 : f32 to vector<16x128xf32>
    %55 = arith.subf %54, %53 : vector<16x128xf32>
    %56 = math.exp %55 : vector<16x128xf32>
    %57 = arith.mulf %52, %56 : vector<16x128xf32>
    %cst_25 = arith.constant 1.000000e+00 : f32
    %58 = vector.broadcast %cst_25 : f32 to vector<16x128xf32>
    %59 = arith.subf %58, %57 : vector<16x128xf32>
    %cst_26 = arith.constant 0.000000e+00 : f32
    %60 = vector.broadcast %cst_26 : f32 to vector<16x128xf32>
    %61 = arith.cmpf olt, %31, %60 : vector<16x128xf32>
    %cst_27 = arith.constant 0.000000e+00 : f32
    %62 = vector.broadcast %cst_27 : f32 to vector<16x128xf32>
    %63 = arith.subf %62, %59 : vector<16x128xf32>
    %64 = arith.select %61, %63, %59 : vector<16x128xi1>, vector<16x128xf32>
    %cst_28 = arith.constant 1.000000e+00 : f32
    %65 = vector.broadcast %cst_28 : f32 to vector<16x128xf32>
    %66 = arith.addf %65, %64 : vector<16x128xf32>
    %67 = arith.mulf %29, %66 : vector<16x128xf32>
    %c0_29 = arith.constant 0 : index
    %c0_30 = arith.constant 0 : index
    %68 = vector.load %arg6[%c0_29, %c0_30] : memref<16x128xf32, #tpu.memory_space<vmem>>, vector<16x128xf32>
    tpu.vector_store %arg6[%c0_29, %c0_30], %67 {strides = array<i32>} : memref<16x128xf32, #tpu.memory_space<vmem>>, vector<16x128xf32>,
    return
  }
  func.func @transform_0(%arg0: i32) -> (i32, i32) {
    %c0_i32 = arith.constant 0 : i32
    %c0_i32_0 = arith.constant 0 : i32
    return %arg0, %c0_i32 : i32, i32
  }
  func.func @transform_1(%arg0: i32) -> (i32, i32) {
    %c0_i32 = arith.constant 0 : i32
    %c0_i32_0 = arith.constant 0 : i32
    %c0_i32_1 = arith.constant 0 : i32
    return %c0_i32, %c0_i32_0 : i32, i32
  }
  func.func @transform_2(%arg0: i32) -> (i32, i32) {
    %c0_i32 = arith.constant 0 : i32
    %c0_i32_0 = arith.constant 0 : i32
    %c0_i32_1 = arith.constant 0 : i32
    return %c0_i32, %c0_i32_0 : i32, i32
  }
  func.func @transform_3(%arg0: i32) -> (i32, i32) {
    %c0_i32 = arith.constant 0 : i32
    %c0_i32_0 = arith.constant 0 : i32
    %c0_i32_1 = arith.constant 0 : i32
    return %c0_i32, %c0_i32_0 : i32, i32
  }
  func.func @transform_4(%arg0: i32) -> (i32, i32) {
    %c0_i32 = arith.constant 0 : i32
    %c0_i32_0 = arith.constant 0 : i32
    %c0_i32_1 = arith.constant 0 : i32
    return %c0_i32, %c0_i32_0 : i32, i32
  }
  func.func @transform_5(%arg0: i32) -> (i32, i32) {
    %c0_i32 = arith.constant 0 : i32
    %c0_i32_0 = arith.constant 0 : i32
    return %arg0, %c0_i32 : i32, i32
  }
}

module attributes {stable_mosaic.version = 11 : i64} {
  func.func @kernel(%arg0: i32, %arg1: memref<16x32xf32, #tpu.memory_space<vmem>>, %arg2: memref<1x32xf32, #tpu.memory_space<vmem>>, %arg3: memref<1x32xf32, #tpu.memory_space<vmem>>, %arg4: memref<16x32xf32, #tpu.memory_space<vmem>>, %arg5: memref<16x32xf32, #tpu.memory_space<vmem>>) attributes {dimension_semantics = [#tpu.dimension_semantics<parallel>], iteration_bounds = array<i64: 1>, scalar_prefetch = 0 : i64, scratch_operands = 0 : i64, tpu.core_type = #tpu.core_type<tc>, window_params = [{transform_indices = @transform_0, window_bounds = array<i64: 16, 32>}, {pipeline_mode = #tpu.pipeline_mode<synchronous>, transform_indices = @transform_1, window_bounds = array<i64: 1, 32>}, {pipeline_mode = #tpu.pipeline_mode<synchronous>, transform_indices = @transform_2, window_bounds = array<i64: 1, 32>}, {transform_indices = @transform_3, window_bounds = array<i64: 16, 32>}, {transform_indices = @transform_4, window_bounds = array<i64: 16, 32>}]} {
    %c0 = arith.constant 0 : index
    %c0_0 = arith.constant 0 : index
    %0 = vector.load %arg1[%c0, %c0_0] : memref<16x32xf32, #tpu.memory_space<vmem>>, vector<16x32xf32>
    %cst = arith.constant dense<0.000000e+00> : vector<16xf32>
    %1 = vector.multi_reduction <add>, %0, %cst [1] : vector<16x32xf32> to vector<16xf32>
    %2 = vector.shape_cast %1 : vector<16xf32> to vector<16x1xf32>
    %cst_1 = arith.constant 3.125000e-02 : f32
    %3 = vector.broadcast %cst_1 : f32 to vector<16x1xf32>
    %4 = arith.mulf %2, %3 : vector<16x1xf32>
    %5 = vector.broadcast %4 : vector<16x1xf32> to vector<16x32xf32>
    %6 = arith.subf %0, %5 : vector<16x32xf32>
    %7 = arith.mulf %6, %6 : vector<16x32xf32>
    %cst_2 = arith.constant dense<0.000000e+00> : vector<16xf32>
    %8 = vector.multi_reduction <add>, %7, %cst_2 [1] : vector<16x32xf32> to vector<16xf32>
    %9 = vector.shape_cast %8 : vector<16xf32> to vector<16x1xf32>
    %cst_3 = arith.constant 3.125000e-02 : f32
    %10 = vector.broadcast %cst_3 : f32 to vector<16x1xf32>
    %11 = arith.mulf %9, %10 : vector<16x1xf32>
    %cst_4 = arith.constant 9.99999974E-6 : f32
    %12 = vector.broadcast %cst_4 : f32 to vector<16x1xf32>
    %13 = arith.addf %11, %12 : vector<16x1xf32>
    %14 = math.rsqrt %13 : vector<16x1xf32>
    %15 = vector.broadcast %14 : vector<16x1xf32> to vector<16x32xf32>
    %16 = arith.mulf %6, %15 : vector<16x32xf32>
    %c0_5 = arith.constant 0 : index
    %c0_6 = arith.constant 0 : index
    %17 = vector.load %arg2[%c0_5, %c0_6] : memref<1x32xf32, #tpu.memory_space<vmem>>, vector<1x32xf32>
    %18 = vector.broadcast %17 : vector<1x32xf32> to vector<16x32xf32>
    %19 = arith.mulf %16, %18 : vector<16x32xf32>
    %c0_7 = arith.constant 0 : index
    %c0_8 = arith.constant 0 : index
    %20 = vector.load %arg3[%c0_7, %c0_8] : memref<1x32xf32, #tpu.memory_space<vmem>>, vector<1x32xf32>
    %21 = vector.broadcast %20 : vector<1x32xf32> to vector<16x32xf32>
    %22 = arith.addf %19, %21 : vector<16x32xf32>
    %c0_9 = arith.constant 0 : index
    %c0_10 = arith.constant 0 : index
    %23 = vector.load %arg4[%c0_9, %c0_10] : memref<16x32xf32, #tpu.memory_space<vmem>>, vector<16x32xf32>
    %24 = arith.addf %22, %23 : vector<16x32xf32>
    %c0_11 = arith.constant 0 : index
    %c0_12 = arith.constant 0 : index
    %25 = vector.load %arg5[%c0_11, %c0_12] : memref<16x32xf32, #tpu.memory_space<vmem>>, vector<16x32xf32>
    tpu.vector_store %arg5[%c0_11, %c0_12], %24 {strides = array<i32>} : memref<16x32xf32, #tpu.memory_space<vmem>>, vector<16x32xf32>,
    return
  }
  func.func @transform_0(%arg0: i32) -> (i32, i32) {
    %c0_i32 = arith.constant 0 : i32
    %c0_i32_0 = arith.constant 0 : i32
    return %arg0, %c0_i32 : i32, i32
  }
  func.func @transform_1(%arg0: i32) -> (i32, i32) {
    %c0_i32 = arith.constant 0 : i32
    %c0_i32_0 = arith.constant 0 : i32
    %c0_i32_1 = arith.constant 0 : i32
    return %c0_i32, %c0_i32_0 : i32, i32
  }
  func.func @transform_2(%arg0: i32) -> (i32, i32) {
    %c0_i32 = arith.constant 0 : i32
    %c0_i32_0 = arith.constant 0 : i32
    %c0_i32_1 = arith.constant 0 : i32
    return %c0_i32, %c0_i32_0 : i32, i32
  }
  func.func @transform_3(%arg0: i32) -> (i32, i32) {
    %c0_i32 = arith.constant 0 : i32
    %c0_i32_0 = arith.constant 0 : i32
    return %arg0, %c0_i32 : i32, i32
  }
  func.func @transform_4(%arg0: i32) -> (i32, i32) {
    %c0_i32 = arith.constant 0 : i32
    %c0_i32_0 = arith.constant 0 : i32
    return %arg0, %c0_i32 : i32, i32
  }
}

module attributes {stable_mosaic.version = 11 : i64} {
  func.func @kernel(%arg0: i32, %arg1: memref<16x64xf32, #tpu.memory_space<vmem>>, %arg2: memref<64x128xf32, #tpu.memory_space<vmem>>, %arg3: memref<1x128xf32, #tpu.memory_space<vmem>>, %arg4: memref<16x128xf32, #tpu.memory_space<vmem>>, %arg5: memref<16x128xf32, #tpu.memory_space<vmem>>) attributes {dimension_semantics = [#tpu.dimension_semantics<parallel>], iteration_bounds = array<i64: 1>, scalar_prefetch = 0 : i64, scratch_operands = 0 : i64, tpu.core_type = #tpu.core_type<tc>, window_params = [{transform_indices = @transform_0, window_bounds = array<i64: 16, 64>}, {pipeline_mode = #tpu.pipeline_mode<synchronous>, transform_indices = @transform_1, window_bounds = array<i64: 64, 128>}, {pipeline_mode = #tpu.pipeline_mode<synchronous>, transform_indices = @transform_2, window_bounds = array<i64: 1, 128>}, {transform_indices = @transform_3, window_bounds = array<i64: 16, 128>}, {transform_indices = @transform_4, window_bounds = array<i64: 16, 128>}]} {
    %c0 = arith.constant 0 : index
    %c0_0 = arith.constant 0 : index
    %0 = vector.load %arg1[%c0, %c0_0] : memref<16x64xf32, #tpu.memory_space<vmem>>, vector<16x64xf32>
    %c0_1 = arith.constant 0 : index
    %c0_2 = arith.constant 0 : index
    %1 = vector.load %arg2[%c0_1, %c0_2] : memref<64x128xf32, #tpu.memory_space<vmem>>, vector<64x128xf32>
    %cst = arith.constant dense<0.000000e+00> : vector<16x128xf32>
    %2 = tpu.matmul %0, %1, %cst {dimension_numbers = #tpu.dot_dimension_numbers<[1], [0], [0], [1], [0, 0, 1, 1], [], []>} : vector<16x64xf32>, vector<64x128xf32>, vector<16x128xf32> -> vector<16x128xf32>
    %c0_3 = arith.constant 0 : index
    %c0_4 = arith.constant 0 : index
    %3 = vector.load %arg3[%c0_3, %c0_4] : memref<1x128xf32, #tpu.memory_space<vmem>>, vector<1x128xf32>
    %4 = vector.broadcast %3 : vector<1x128xf32> to vector<16x128xf32>
    %5 = arith.addf %2, %4 : vector<16x128xf32>
    %c0_5 = arith.constant 0 : index
    %c0_6 = arith.constant 0 : index
    %6 = vector.load %arg4[%c0_5, %c0_6] : memref<16x128xf32, #tpu.memory_space<vmem>>, vector<16x128xf32>
    %7 = arith.addf %5, %6 : vector<16x128xf32>
    %c0_7 = arith.constant 0 : index
    %c0_8 = arith.constant 0 : index
    %8 = vector.load %arg5[%c0_7, %c0_8] : memref<16x128xf32, #tpu.memory_space<vmem>>, vector<16x128xf32>
    tpu.vector_store %arg5[%c0_7, %c0_8], %7 {strides = array<i32>} : memref<16x128xf32, #tpu.memory_space<vmem>>, vector<16x128xf32>,
    return
  }
  func.func @transform_0(%arg0: i32) -> (i32, i32) {
    %c0_i32 = arith.constant 0 : i32
    %c0_i32_0 = arith.constant 0 : i32
    return %arg0, %c0_i32 : i32, i32
  }
  func.func @transform_1(%arg0: i32) -> (i32, i32) {
    %c0_i32 = arith.constant 0 : i32
    %c0_i32_0 = arith.constant 0 : i32
    %c0_i32_1 = arith.constant 0 : i32
    return %c0_i32, %c0_i32_0 : i32, i32
  }
  func.func @transform_2(%arg0: i32) -> (i32, i32) {
    %c0_i32 = arith.constant 0 : i32
    %c0_i32_0 = arith.constant 0 : i32
    %c0_i32_1 = arith.constant 0 : i32
    return %c0_i32, %c0_i32_0 : i32, i32
  }
  func.func @transform_3(%arg0: i32) -> (i32, i32) {
    %c0_i32 = arith.constant 0 : i32
    %c0_i32_0 = arith.constant 0 : i32
    return %arg0, %c0_i32 : i32, i32
  }
  func.func @transform_4(%arg0: i32) -> (i32, i32) {
    %c0_i32 = arith.constant 0 : i32
    %c0_i32_0 = arith.constant 0 : i32
    return %arg0, %c0_i32 : i32, i32
  }
}

module attributes {stable_mosaic.version = 11 : i64} {
  func.func @kernel(%arg0: i32, %arg1: memref<16x32xf32, #tpu.memory_space<vmem>>, %arg2: memref<32x512xf32, #tpu.memory_space<vmem>>, %arg3: memref<16x512xf32, #tpu.memory_space<vmem>>) attributes {dimension_semantics = [#tpu.dimension_semantics<parallel>], iteration_bounds = array<i64: 1>, scalar_prefetch = 0 : i64, scratch_operands = 0 : i64, tpu.core_type = #tpu.core_type<tc>, window_params = [{transform_indices = @transform_0, window_bounds = array<i64: 16, 32>}, {pipeline_mode = #tpu.pipeline_mode<synchronous>, transform_indices = @transform_1, window_bounds = array<i64: 32, 512>}, {transform_indices = @transform_2, window_bounds = array<i64: 16, 512>}]} {
    %c0 = arith.constant 0 : index
    %c0_0 = arith.constant 0 : index
    %0 = vector.load %arg1[%c0, %c0_0] : memref<16x32xf32, #tpu.memory_space<vmem>>, vector<16x32xf32>
    %c0_1 = arith.constant 0 : index
    %c0_2 = arith.constant 0 : index
    %1 = vector.load %arg2[%c0_1, %c0_2] : memref<32x512xf32, #tpu.memory_space<vmem>>, vector<32x512xf32>
    %cst = arith.constant dense<0.000000e+00> : vector<16x512xf32>
    %2 = tpu.matmul %0, %1, %cst {dimension_numbers = #tpu.dot_dimension_numbers<[1], [0], [0], [1], [0, 0, 1, 1], [], []>} : vector<16x32xf32>, vector<32x512xf32>, vector<16x512xf32> -> vector<16x512xf32>
    %c0_3 = arith.constant 0 : index
    %c0_4 = arith.constant 0 : index
    %3 = vector.load %arg3[%c0_3, %c0_4] : memref<16x512xf32, #tpu.memory_space<vmem>>, vector<16x512xf32>
    tpu.vector_store %arg3[%c0_3, %c0_4], %2 {strides = array<i32>} : memref<16x512xf32, #tpu.memory_space<vmem>>, vector<16x512xf32>,
    return
  }
  func.func @transform_0(%arg0: i32) -> (i32, i32) {
    %c0_i32 = arith.constant 0 : i32
    %c0_i32_0 = arith.constant 0 : i32
    return %arg0, %c0_i32 : i32, i32
  }
  func.func @transform_1(%arg0: i32) -> (i32, i32) {
    %c0_i32 = arith.constant 0 : i32
    %c0_i32_0 = arith.constant 0 : i32
    %c0_i32_1 = arith.constant 0 : i32
    return %c0_i32, %c0_i32_0 : i32, i32
  }
  func.func @transform_2(%arg0: i32) -> (i32, i32) {
    %c0_i32 = arith.constant 0 : i32
    %c0_i32_0 = arith.constant 0 : i32
    return %arg0, %c0_i32 : i32, i32
  }
}

module attributes {stable_mosaic.version = 11 : i64} {
  func.func @_pool_kernel(%arg0: i32, %arg1: memref<1x8x32xf32, #tpu.memory_space<vmem>>, %arg2: memref<1x1x32xf32, #tpu.memory_space<vmem>>, %arg3: memref<1x1x32xf32, #tpu.memory_space<vmem>>) attributes {dimension_semantics = [#tpu.dimension_semantics<parallel>], iteration_bounds = array<i64: 2>, scalar_prefetch = 0 : i64, scratch_operands = 0 : i64, tpu.core_type = #tpu.core_type<tc>, window_params = [{transform_indices = @transform_0, window_bounds = array<i64: 1, 8, 32>}, {transform_indices = @transform_1, window_bounds = array<i64: 1, 1, 32>}, {transform_indices = @transform_2, window_bounds = array<i64: 1, 1, 32>}]} {
    %c0 = arith.constant 0 : index
    %c0_0 = arith.constant 0 : index
    %c0_1 = arith.constant 0 : index
    %0 = vector.load %arg1[%c0, %c0_0, %c0_1] : memref<1x8x32xf32, #tpu.memory_space<vmem>>, vector<1x8x32xf32>
    %1 = vector.shape_cast %0 : vector<1x8x32xf32> to vector<8x32xf32>
    %cst = arith.constant dense<0.000000e+00> : vector<32xf32>
    %2 = vector.multi_reduction <add>, %1, %cst [0] : vector<8x32xf32> to vector<32xf32>
    %3 = vector.shape_cast %2 : vector<32xf32> to vector<1x32xf32>
    %cst_2 = arith.constant 1.250000e-01 : f32
    %4 = vector.broadcast %cst_2 : f32 to vector<1x32xf32>
    %5 = arith.mulf %3, %4 : vector<1x32xf32>
    %c0_3 = arith.constant 0 : index
    %c0_4 = arith.constant 0 : index
    %c0_5 = arith.constant 0 : index
    %6 = vector.load %arg2[%c0_3, %c0_4, %c0_5] : memref<1x1x32xf32, #tpu.memory_space<vmem>>, vector<1x1x32xf32>
    %7 = vector.shape_cast %6 : vector<1x1x32xf32> to vector<1x32xf32>
    %8 = vector.shape_cast %5 : vector<1x32xf32> to vector<1x1x32xf32>
    tpu.vector_store %arg2[%c0_3, %c0_4, %c0_5], %8 {strides = array<i32>} : memref<1x1x32xf32, #tpu.memory_space<vmem>>, vector<1x1x32xf32>,
    %cst_6 = arith.constant dense<0xFF800000> : vector<32xf32>
    %9 = vector.multi_reduction <maximumf>, %1, %cst_6 [0] : vector<8x32xf32> to vector<32xf32>
    %10 = vector.shape_cast %9 : vector<32xf32> to vector<1x32xf32>
    %c0_7 = arith.constant 0 : index
    %c0_8 = arith.constant 0 : index
    %c0_9 = arith.constant 0 : index
    %11 = vector.load %arg3[%c0_7, %c0_8, %c0_9] : memref<1x1x32xf32, #tpu.memory_space<vmem>>, vector<1x1x32xf32>
    %12 = vector.shape_cast %11 : vector<1x1x32xf32> to vector<1x32xf32>
    %13 = vector.shape_cast %10 : vector<1x32xf32> to vector<1x1x32xf32>
    tpu.vector_store %arg3[%c0_7, %c0_8, %c0_9], %13 {strides = array<i32>} : memref<1x1x32xf32, #tpu.memory_space<vmem>>, vector<1x1x32xf32>,
    return
  }
  func.func @transform_0(%arg0: i32) -> (i32, i32, i32) {
    %c0_i32 = arith.constant 0 : i32
    %c0_i32_0 = arith.constant 0 : i32
    %c0_i32_1 = arith.constant 0 : i32
    return %arg0, %c0_i32, %c0_i32_0 : i32, i32, i32
  }
  func.func @transform_1(%arg0: i32) -> (i32, i32, i32) {
    %c0_i32 = arith.constant 0 : i32
    %c0_i32_0 = arith.constant 0 : i32
    %c0_i32_1 = arith.constant 0 : i32
    return %arg0, %c0_i32, %c0_i32_0 : i32, i32, i32
  }
  func.func @transform_2(%arg0: i32) -> (i32, i32, i32) {
    %c0_i32 = arith.constant 0 : i32
    %c0_i32_0 = arith.constant 0 : i32
    %c0_i32_1 = arith.constant 0 : i32
    return %arg0, %c0_i32, %c0_i32_0 : i32, i32, i32
  }
}

</mosaic_0001>

<bundles_post_ra>
// kernel: cross_transformer_avg_mod.31
= control target key start
LH: loop header
LB: loop body
LE: loop exit
PB: predicated region body
PF: predicated region fallthrough
CT: control target
= control target key end

     0   :  { %7 = vsyncpa [#allocation3], 0  ;;  %s247_s9 = smov [#allocation2]   ;;  %s299_s0 = inlined_call_operand.vmem [shape: f32[16,32], index: 0, kind: input, shape index: {}]   ;;  %s300_s1 = inlined_call_operand.hbm [shape: f32[32,512], index: 1, kind: input, shape index: {}]   ;;  %s301_s2 = inlined_call_operand.vmem [shape: f32[16,512], index: 2, kind: output, shape index: {}]  }
   0x1   :  { %s15_s10 = sshll.u32 %s247_s9, 4  ;;  %s16_s10 = int_to_ptr.vmem [resolvable:$true] %s15_s10 }
   0x2   :  { %s233_s11 = scalar_lea.vmem %s16_s10, 2048  ;;  %p238_p1 = scmp.lt.s32.totalorder %s16_s10, %s16_s10 }
   0x3   :  { %p234_p0 = scmp.ne.s32.totalorder %s16_s10, %s233_s11  ;;  %p239_p2 = scmp.lt.s32.totalorder %s233_s11, %s233_s11 }
   0x5   :  { %p240_p3 = por %p239_p2, %p238_p1 }
   0x7   :  { %p241_p4 = pnand %p240_p3, %p234_p0 }
   0x9   :  { %244 = shalt.err (!%p241_p4)
}
   0xa   :  { %s248_s12 = smov 512   ;;  %s249_s13 = smov 32  }
   0xb   :  { %21 = dma.hbm_to_vmem [thread:$0]  %s300_s1, 2048, %s16_s10, [#allocation3], %s248_s12, %s248_s12, %s249_s13  }
   0xc   :  { %245 = dma.done.wait [#allocation3], 2048  }
   0xd   :  { %246 = vsyncadd [#allocation3], 4294965248  ;;  %v250_v0 = vmov 0.0   ;;  %v40_v1 = vld [vmem:[#allocation2 + $0x68] sm:$0xff]  ;;  %v42_v2 = vld [vmem:[#allocation2 + $0x78] sm:$0xff]  ;;  %vm43_vm0 = vcmask 261120  }
   0xe   :  { %114 = vmatprep.mubr.f32.mxu0 %v250_v0  ;;  %191 = vmatprep.mubr.f32.mxu1 %v250_v0  ;;  %v39_v3 = vld [vmem:[#allocation2 + $0x60] sm:$0xff]  ;;  %v41_v4 = vld [vmem:[#allocation2 + $0x70] sm:$0xff]  ;;  %v36_v5 = vld [vmem:[#allocation2 + $0x48] sm:$0xff] }
   0xf   :  { %74 = vmatprep.subr.mxu0 %v40_v1  ;;  %151 = vmatprep.subr.mxu1 %v42_v2  ;;  %v38_v6 = vld [vmem:[#allocation2 + $0x58] sm:$0xff]  ;;  %v35_v7 = vld [vmem:[#allocation2 + $0x40] sm:$0xff]  ;;  %v37_v8 = vld [vmem:[#allocation2 + $0x50] sm:$0xff] }
  0x10   :  { %75 = vmatpush1.msra.mxu0 %v39_v3  ;;  %152 = vmatpush1.msra.mxu1 %v41_v4  ;;  %v32_v9 = vld [vmem:[#allocation2 + $0x28] sm:$0xff]  ;;  %v34_v10 = vld [vmem:[#allocation2 + $0x38] sm:$0xff]  ;;  %v31_v11 = vld [vmem:[#allocation2 + $0x20] sm:$0xff] }
  0x11   :  { %76 = vmatprep.subr.mxu0 %v36_v5  ;;  %153 = vmatprep.subr.mxu1 %v38_v6  ;;  %v33_v12 = vld [vmem:[#allocation2 + $0x30] sm:$0xff]  ;;  %v28_v13 = vld [vmem:[#allocation2 + $0x8] sm:$0xff]  ;;  %v30_v14 = vld [vmem:[#allocation2 + $0x18] sm:$0xff] }
  0x12   :  { %77 = vmatpush1.msra.mxu0 %v35_v7  ;;  %154 = vmatpush1.msra.mxu1 %v37_v8  ;;  %v27_v15 = vld [vmem:[#allocation2] sm:$0xff]  ;;  %v29_v16 = vld [vmem:[#allocation2 + $0x10] sm:$0xff]  ;;  %v26_v18 = vld [vmem:[%s299_s0 + $0x8] sm:$0xff] }
  0x13   :  { %78 = vmatprep.subr.mxu0 %v32_v9  ;;  %155 = vmatprep.subr.mxu1 %v34_v10  ;;  %v25_v17 = vld [vmem:[%s299_s0] sm:$0xff] }
  0x14   :  { %79 = vmatpush1.msra.mxu0 %v31_v11  ;;  %156 = vmatpush1.msra.mxu1 %v33_v12 }
  0x15   :  { %80 = vmatprep.subr.mxu0 %v28_v13  ;;  %157 = vmatprep.subr.mxu1 %v30_v14 }
  0x16   :  { %81 = vmatpush1.msra.mxu0 %v27_v15  ;;  %158 = vmatpush1.msra.mxu1 %v29_v16 }
  0x17   :  { %217 = vmatmul.mubr.msk.f32.vlgmr.msra.gmra.mxu0 %vm43_vm0, %v25_v17  ;;  %219 = vmatmul.mubr.msk.f32.vlgmr.msra.gmra.mxu1 %vm43_vm0, %v25_v17 }
  0x18   :  { %120 = vmatprep.mubr.f32.mxu0 %v250_v0  ;;  %197 = vmatprep.mubr.f32.mxu1 %v250_v0 }
  0x1b   :  { %218 = vmatmul.mubr.msk.f32.gmra.mxu0 %vm43_vm0, %v26_v18  ;;  %220 = vmatmul.mubr.msk.f32.gmra.mxu1 %vm43_vm0, %v26_v18 }
  0xd7   :  { %v116_v19 = vpop.f32.mrf.mxu0  ;;  %v193_v20 = vpop.f32.mrf.mxu1 }
  0xd8   :  { %204 = vst [vmem:[%s301_s2] sm:$0xff] %v116_v19  ;;  %206 = vst [vmem:[%s301_s2 + $0x10] sm:$0xff] %v193_v20 }
  0xd9   :  { %v118_v21 = vpop.f32.mrf.mxu0  ;;  %v195_v22 = vpop.f32.mrf.mxu1 }
  0xda   :  { %205 = vst [vmem:[%s301_s2 + $0x8] sm:$0xff] %v118_v21  ;;  %207 = vst [vmem:[%s301_s2 + $0x18] sm:$0xff] %v195_v22 }
  0xdb   :  { %v122_v23 = vpop.f32.mrf.mxu0  ;;  %v199_v24 = vpop.f32.mrf.mxu1 }
  0xdc   :  { %208 = vst [vmem:[%s301_s2 + $0x20] sm:$0xff] %v122_v23  ;;  %210 = vst [vmem:[%s301_s2 + $0x30] sm:$0xff] %v199_v24 }
  0xdd   :  { %v124_v25 = vpop.f32.mrf.mxu0  ;;  %v201_v26 = vpop.f32.mrf.mxu1 }
  0xde   :  { %209 = vst [vmem:[%s301_s2 + $0x28] sm:$0xff] %v124_v25  ;;  %211 = vst [vmem:[%s301_s2 + $0x38] sm:$0xff] %v201_v26 }
  0xdf   :  { %216 = vsyncpa [#allocation3], 1 }

// kernel: cross_transformer_avg_mod.30
= control target key start
LH: loop header
LB: loop body
LE: loop exit
PB: predicated region body
PF: predicated region fallthrough
CT: control target
= control target key end

     0   :  { %vm19_vm0 = vcmask 261120   ;;  %v180_v17 = vmov 0.0   ;;  %s260_s0 = inlined_call_operand.vmem [shape: f32[16,32], index: 0, kind: input, shape index: {}]   ;;  %s261_s3 = inlined_call_operand.vmem [shape: f32[32,256], index: 3, kind: input, shape index: {}]   ;;  %s262_s1 = inlined_call_operand.vmem [shape: f32[1,32], index: 1, kind: input, shape index: {}]   ;;  %s263_s2 = inlined_call_operand.vmem [shape: f32[1,32], index: 2, kind: input, shape index: {}]   ;;  %s264_s4 = inlined_call_operand.vmem [shape: f32[16,256], index: 4, kind: output, shape index: {}]  }
   0x1   :  { %v17_v0 = vld [vmem:[%s260_s0] sm:$0xff]  ;;  %v18_v1 = vld [vmem:[%s260_s0 + $0x8] sm:$0xff]  ;;  %v71_v14 = vld [vmem:[%s261_s3 + $0x38] sm:$0xff]  ;;  %142 = vmatprep.mubr.f32.mxu0 %v180_v17  ;;  %148 = vmatprep.mubr.f32.mxu1 %v180_v17 }
   0x2   :  { %v20_v2 = vsel %vm19_vm0, %v17_v0, 0.0  ;;  %v23_v3 = vsel %vm19_vm0, %v18_v1, 0.0  ;;  %v70_v15 = vld [vmem:[%s261_s3 + $0x30] sm:$0xff]  ;;  %v69_v16 = vld [vmem:[%s261_s3 + $0x28] sm:$0xff]  ;;  %102 = vmatprep.subr.mxu0 %v71_v14  ;;  %v68_v18 = vld [vmem:[%s261_s3 + $0x20] sm:$0xff]  ;;  %167 = vmatprep.subr.mxu1 %v71_v14 }
   0x3   :  { %21 = vadd.xlane.f32.xlu0 %v20_v2  ;;  %103 = vmatpush1.msra.mxu0 %v70_v15  ;;  %v67_v19 = vld [vmem:[%s261_s3 + $0x18] sm:$0xff]  ;;  %v66_v20 = vld [vmem:[%s261_s3 + $0x10] sm:$0xff]  ;;  %v65_v21 = vld [vmem:[%s261_s3 + $0x8] sm:$0xff] }
   0x4   :  { %171 = vmatpush1.msra.mxu1 %v70_v15  ;;  %104 = vmatprep.subr.mxu0 %v69_v16  ;;  %v64_v22 = vld [vmem:[%s261_s3] sm:$0xff] }
   0x5   :  { %168 = vmatprep.subr.mxu1 %v69_v16  ;;  %105 = vmatpush1.msra.mxu0 %v68_v18  ;;  %v163_v30 = vld [vmem:[%s262_s1] ss:$0 sm:$0xff] }
   0x6   :  { %172 = vmatpush1.msra.mxu1 %v68_v18  ;;  %106 = vmatprep.subr.mxu0 %v67_v19  ;;  %v164_v32 = vld [vmem:[%s263_s2] ss:$0 sm:$0xff] }
   0x7   :  { %24 = vadd.xlane.f32.xlu0 %v23_v3  ;;  %169 = vmatprep.subr.mxu1 %v67_v19 }
   0x8   :  { %107 = vmatpush1.msra.mxu0 %v66_v20  ;;  %173 = vmatpush1.msra.mxu1 %v66_v20 }
   0x9   :  { %108 = vmatprep.subr.mxu0 %v65_v21  ;;  %170 = vmatprep.subr.mxu1 %v65_v21 }
   0xa   :  { %109 = vmatpush1.msra.mxu0 %v64_v22  ;;  %174 = vmatpush1.msra.mxu1 %v64_v22 }
  0x8c   :  { %v22_v4 = vpop.xlane.xlu0 %21 }
  0x8d   :  { %v26_v5 = vmul.f32 0.03125, %v22_v4 }
  0x8f   :  { %v28_v6 = vsub.f32 %v17_v0, %v26_v5 }
  0x90   :  { %v25_v7 = vpop.xlane.xlu0 %24 }
  0x91   :  { %v27_v8 = vmul.f32 0.03125, %v25_v7  ;;  %v30_v9 = vmul.f32 %v28_v6, %v28_v6 }
  0x93   :  { %v29_v10 = vsub.f32 %v18_v1, %v27_v8  ;;  %v32_v11 = vsel %vm19_vm0, %v30_v9, 0.0 }
  0x94   :  { %33 = vadd.xlane.f32.xlu1 %v32_v11 }
  0x95   :  { %v31_v12 = vmul.f32 %v29_v10, %v29_v10 }
  0x97   :  { %v35_v13 = vsel %vm19_vm0, %v31_v12, 0.0 }
  0x98   :  { %36 = vadd.xlane.f32.xlu1 %v35_v13 }
 0x11d   :  { %v34_v23 = vpop.xlane.xlu1 %33 }
 0x11e   :  { %v38_v24 = vmul.f32 0.03125, %v34_v23 }
 0x120   :  { %v40_v25 = vadd.f32 1e-05, %v38_v24 }
 0x121   :  { %v37_v26 = vpop.xlane.xlu1 %36 }
 0x122   :  { %176 = vrsqrt.f32 %v40_v25  ;;  %v39_v27 = vmul.f32 0.03125, %v37_v26 }
 0x124   :  { %v41_v28 = vadd.f32 1e-05, %v39_v27 }
 0x126   :  { %178 = vrsqrt.f32 %v41_v28 }
 0x12f   :  { %v177_v29 = vpop.eup %176 }
 0x130   :  { %v44_v31 = vmul.f32 %v177_v29, %v28_v6 }
 0x132   :  { %v53_v33 = vmul.f32 %v163_v30, %v44_v31 }
 0x133   :  { %v179_v34 = vpop.eup %178 }
 0x134   :  { %v62_v35 = vadd.f32 %v164_v32, %v53_v33  ;;  %v45_v36 = vmul.f32 %v179_v34, %v29_v10 }
 0x136   :  { %165 = vmatmul.mubr.msk.f32.vlgmr.msra.gmra.mxu0 %vm19_vm0, %v62_v35  ;;  %v54_v37 = vmul.f32 %v163_v30, %v45_v36 }
 0x138   :  { %v63_v38 = vadd.f32 %v164_v32, %v54_v37 }
 0x13a   :  { %166 = vmatmul.mubr.msk.f32.vlgmr.msra.gmra.mxu1 %vm19_vm0, %v63_v38 }
 0x1f6   :  { %v144_v39 = vpop.f32.mrf.mxu0 }
 0x1f7   :  { %155 = vst [vmem:[%s264_s4] sm:$0xff] %v144_v39 }
 0x1f8   :  { %v146_v40 = vpop.f32.mrf.mxu0 }
 0x1f9   :  { %156 = vst [vmem:[%s264_s4 + $0x8] sm:$0xff] %v146_v40 }
 0x1fa   :  { %v150_v41 = vpop.f32.mrf.mxu1 }
 0x1fb   :  { %157 = vst [vmem:[%s264_s4 + $0x10] sm:$0xff] %v150_v41 }
 0x1fc   :  { %v152_v42 = vpop.f32.mrf.mxu1 }
 0x1fd   :  { %158 = vst [vmem:[%s264_s4 + $0x18] sm:$0xff] %v152_v42 }

// kernel: cross_transformer_avg_mod.32
= control target key start
LH: loop header
LB: loop body
LE: loop exit
PB: predicated region body
PF: predicated region fallthrough
CT: control target
= control target key end

     0   :  { %s516_s12 = smov 0   ;;  %s551_s0 = inlined_call_operand.vmem [shape: f32[8,8,64], index: 0, kind: input, shape index: {}]   ;;  %s552_s1 = inlined_call_operand.vmem [shape: f32[8,8,64], index: 1, kind: input, shape index: {}]   ;;  %s553_s2 = inlined_call_operand.vmem [shape: f32[8,8,64], index: 2, kind: input, shape index: {}]   ;;  %s554_s3 = inlined_call_operand.vmem [shape: f32[8,8,64], index: 3, kind: output, shape index: {}]  }
   0x1 LB: > { %s444_s13 = sadd.s32 4294967295, %s492_s12   ;;  %p448_p0 = scmp.ge.s32.totalorder %s492_s12, 1  ;;  %s492_s12 = sphi %s516_s12, %s13_s12  }
   0x2   : > { %p154_p1 = scmp.lt.s32.totalorder %s492_s12, 9 }
   0x4   : > { %p155_p2 = pnand %p448_p0, %p154_p1 }
   0x5   : > { %p184_p3 = scmp.lt.s32.totalorder (!%p155_p2), %s444_s13, 7 }
   0x6   : > { %158 = sbr.rel (%p155_p2) target bundleno = 720 (0x2d0), region = 32 }
   0xb   : > { %v494_v0 = vmov 0.0   ;;  %vm495_vm0 = vmmov 0   ;;  %s556_s13 = smov (!%p184_p3, %s444_s13), 7  ;;  %vm203_vm1 = vcmask 523264   ;;  %vm281_vm2 = vcmask 64512  }
   0xc   : > { %462 = vmatprep.subr.mxu0 %v494_v0  ;;  %464 = vmatprep.mubr.msk.f32.mxu0 %vm495_vm0, %v494_v0  ;;  %s524_s14 = sshll.u32 %s556_s13, 3 }
   0xd   : > { %467 = vmatprep.subr.mxu1 %v494_v0  ;;  %469 = vmatprep.mubr.msk.f32.mxu1 %vm495_vm0, %v494_v0  ;;  %s191_s17 = scalar_lea.vmem %s552_s1, %s524_s14  ;;  %s187_s20 = scalar_lea.vmem %s551_s0, %s524_s14 }
   0xe   : > { %v201_v1 = vld [vmem:[%s191_s17] sm:$0xff]  ;;  %s195_s23 = scalar_lea.vmem %s553_s2, %s524_s14  ;;  %s199_s26 = scalar_lea.vmem %s554_s3, %s524_s14 }
   0xf   : > { %463 = vmatpush3.xpose.msk.msra.mxu0 %vm203_vm1, %v201_v1  ;;  %v200_v2 = vld [vmem:[%s187_s20] sm:$0xff] }
  0x10   : > { %v202_v12 = vld [vmem:[%s195_s23] sm:$0xff] }
  0x11   : > { %468 = vmatpush3.msra.mxu1 %v202_v12 }
  0x12   : > { %465 = vmatmul.mubr.msk.f32.vlgmr.msra.gmra.mxu0 %vm203_vm1, %v200_v2 }
  0xd2   : > { %v276_v3 = vpop.f32.mrf.mxu0 }
  0xd3   : > { %v280_v4 = vmul.f32 0.125, %v276_v3 }
  0xd4   : > { %v466_v5 = vpop.f32.mrf.mxu0 }
  0xd5   : > { %v282_v6 = vsel %vm281_vm2, %v280_v4, -inf }
  0xd6   : > { %283 = vmax.xlane.f32.xlu0 %v282_v6 }
 0x15f   : > { %v284_v7 = vpop.xlane.xlu0 %283 }
 0x160   : > { %v285_v8 = vsub.f32 %v280_v4, %v284_v7 }
 0x162   : > { %v286_v9 = vmul.f32 1.442695, %v285_v8 }
 0x164   : > { %482 = vpow2.f32 %v286_v9 }
 0x171   : > { %v483_v10 = vpop.eup %482 }
 0x172   : > { %v288_v11 = vsel %vm281_vm2, %v483_v10, 0.0 }
 0x173   : > { %289 = vadd.xlane.f32.xlu0 %v288_v11 }
 0x1fc   : > { %v290_v13 = vpop.xlane.xlu0 %289 }
 0x1fd   : > { %484 = vrcp.f32 %v290_v13 }
 0x20a   : > { %v485_v14 = vpop.eup %484 }
 0x20b   : > { %v292_v15 = vmul.f32 %v485_v14, %v483_v10 }
 0x20d   : > { %470 = vmatmul.mubr.msk.f32.vlgmr.msra.gmra.mxu1 %vm281_vm2, %v292_v15 }
 0x2cd   : > { %v362_v16 = vpop.f32.mrf.mxu1 }
 0x2ce   : > { %366 = vst.msk [vmem:[%s199_s26] sm:$0xff] %vm203_vm1, %v362_v16 }
 0x2cf   : > { %v471_v17 = vpop.f32.mrf.mxu1 }
 0x2d0 PF: > { %s13_s12 = sadd.s32 1, %s492_s12  }
 0x2d1   : > { %p10_p4 = scmp.ge.s32.totalorder %s13_s12, 10  }
 0x2d3   :  { %12 = sbr.rel (!%p10_p4) target bundleno = 1 (0x1), region = 68 }

// kernel: cross_transformer_avg_mod.33
= control target key start
LH: loop header
LB: loop body
LE: loop exit
PB: predicated region body
PF: predicated region fallthrough
CT: control target
= control target key end

     0   :  { %s364_s1 = inlined_call_operand.vmem [shape: f32[256,128], index: 1, kind: input, shape index: {}]   ;;  %s365_s0 = inlined_call_operand.vmem [shape: f32[16,256], index: 0, kind: input, shape index: {}]   ;;  %s366_s2 = inlined_call_operand.vmem [shape: f32[1,128], index: 2, kind: input, shape index: {}]   ;;  %s367_s3 = inlined_call_operand.vmem [shape: f32[16,128], index: 3, kind: input, shape index: {}]   ;;  %s368_s4 = inlined_call_operand.vmem [shape: f32[16,128], index: 4, kind: output, shape index: {}]  }
   0x1   :  { %v52_v0 = vld [vmem:[%s364_s1 + $0xf8] sm:$0xff]  ;;  %v51_v2 = vld [vmem:[%s364_s1 + $0xf0] sm:$0xff]  ;;  %v50_v4 = vld [vmem:[%s364_s1 + $0xe8] sm:$0xff] }
   0x2   :  { %v36_v1 = vld [vmem:[%s364_s1 + $0x78] sm:$0xff]  ;;  %146 = vmatprep.subr.mxu0 %v52_v0  ;;  %184 = vmatprep.subr.mxu1 %v52_v0  ;;  %v35_v3 = vld [vmem:[%s364_s1 + $0x70] sm:$0xff]  ;;  %v34_v5 = vld [vmem:[%s364_s1 + $0x68] sm:$0xff] }
   0x3   :  { %147 = vmatpush3.msra.mxu0 %v36_v1  ;;  %200 = vmatpush3.msra.mxu1 %v36_v1  ;;  %v49_v6 = vld [vmem:[%s364_s1 + $0xe0] sm:$0xff]  ;;  %v48_v8 = vld [vmem:[%s364_s1 + $0xd8] sm:$0xff]  ;;  %v47_v10 = vld [vmem:[%s364_s1 + $0xd0] sm:$0xff] }
   0x4   :  { %148 = vmatprep.subr.mxu0 %v51_v2  ;;  %185 = vmatprep.subr.mxu1 %v51_v2  ;;  %v33_v7 = vld [vmem:[%s364_s1 + $0x60] sm:$0xff]  ;;  %v32_v9 = vld [vmem:[%s364_s1 + $0x58] sm:$0xff]  ;;  %v31_v11 = vld [vmem:[%s364_s1 + $0x50] sm:$0xff] }
   0x5   :  { %149 = vmatpush3.msra.mxu0 %v35_v3  ;;  %201 = vmatpush3.msra.mxu1 %v35_v3  ;;  %v46_v12 = vld [vmem:[%s364_s1 + $0xc8] sm:$0xff]  ;;  %v45_v14 = vld [vmem:[%s364_s1 + $0xc0] sm:$0xff]  ;;  %v44_v16 = vld [vmem:[%s364_s1 + $0xb8] sm:$0xff] }
   0x6   :  { %150 = vmatprep.subr.mxu0 %v50_v4  ;;  %186 = vmatprep.subr.mxu1 %v50_v4  ;;  %v30_v13 = vld [vmem:[%s364_s1 + $0x48] sm:$0xff]  ;;  %v29_v15 = vld [vmem:[%s364_s1 + $0x40] sm:$0xff]  ;;  %v28_v17 = vld [vmem:[%s364_s1 + $0x38] sm:$0xff] }
   0x7   :  { %151 = vmatpush3.msra.mxu0 %v34_v5  ;;  %202 = vmatpush3.msra.mxu1 %v34_v5  ;;  %v43_v18 = vld [vmem:[%s364_s1 + $0xb0] sm:$0xff]  ;;  %v42_v20 = vld [vmem:[%s364_s1 + $0xa8] sm:$0xff]  ;;  %v41_v22 = vld [vmem:[%s364_s1 + $0xa0] sm:$0xff] }
   0x8   :  { %152 = vmatprep.subr.mxu0 %v49_v6  ;;  %187 = vmatprep.subr.mxu1 %v49_v6  ;;  %v27_v19 = vld [vmem:[%s364_s1 + $0x30] sm:$0xff]  ;;  %v26_v21 = vld [vmem:[%s364_s1 + $0x28] sm:$0xff]  ;;  %v25_v23 = vld [vmem:[%s364_s1 + $0x20] sm:$0xff] }
   0x9   :  { %153 = vmatpush3.msra.mxu0 %v33_v7  ;;  %203 = vmatpush3.msra.mxu1 %v33_v7  ;;  %v40_v24 = vld [vmem:[%s364_s1 + $0x98] sm:$0xff]  ;;  %v39_v26 = vld [vmem:[%s364_s1 + $0x90] sm:$0xff]  ;;  %v38_v28 = vld [vmem:[%s364_s1 + $0x88] sm:$0xff] }
   0xa   :  { %154 = vmatprep.subr.mxu0 %v48_v8  ;;  %188 = vmatprep.subr.mxu1 %v48_v8  ;;  %v24_v25 = vld [vmem:[%s364_s1 + $0x18] sm:$0xff]  ;;  %v23_v27 = vld [vmem:[%s364_s1 + $0x10] sm:$0xff]  ;;  %v22_v29 = vld [vmem:[%s364_s1 + $0x8] sm:$0xff] }
   0xb   :  { %155 = vmatpush3.msra.mxu0 %v32_v9  ;;  %204 = vmatpush3.msra.mxu1 %v32_v9  ;;  %v37_v30 = vld [vmem:[%s364_s1 + $0x80] sm:$0xff]  ;;  %v18_v32 = vld [vmem:[%s365_s0 + $0x8] sm:$0xff]  ;;  %v20_v33 = vld [vmem:[%s365_s0 + $0x18] sm:$0xff] }
   0xc   :  { %156 = vmatprep.subr.mxu0 %v47_v10  ;;  %189 = vmatprep.subr.mxu1 %v47_v10  ;;  %v21_v31 = vld [vmem:[%s364_s1] sm:$0xff]  ;;  %v19_v35 = vld [vmem:[%s365_s0 + $0x10] sm:$0xff]  ;;  %v136_v44 = vld [vmem:[%s367_s3 + $0x8] sm:$0xff] }
   0xd   :  { %157 = vmatpush3.msra.mxu0 %v31_v11  ;;  %205 = vmatpush3.msra.mxu1 %v31_v11  ;;  %v17_v34 = vld [vmem:[%s365_s0] sm:$0xff] }
   0xe   :  { %158 = vmatprep.subr.mxu0 %v46_v12  ;;  %190 = vmatprep.subr.mxu1 %v46_v12  ;;  %v145_v38 = vld [vmem:[%s366_s2] ss:$0 sm:$0xff] }
   0xf   :  { %159 = vmatpush3.msra.mxu0 %v30_v13  ;;  %206 = vmatpush3.msra.mxu1 %v30_v13  ;;  %v135_v43 = vld [vmem:[%s367_s3] sm:$0xff] }
  0x10   :  { %160 = vmatprep.subr.mxu0 %v45_v14  ;;  %191 = vmatprep.subr.mxu1 %v45_v14 }
  0x11   :  { %161 = vmatpush3.msra.mxu0 %v29_v15  ;;  %207 = vmatpush3.msra.mxu1 %v29_v15 }
  0x12   :  { %162 = vmatprep.subr.mxu0 %v44_v16  ;;  %192 = vmatprep.subr.mxu1 %v44_v16 }
  0x13   :  { %163 = vmatpush3.msra.mxu0 %v28_v17  ;;  %208 = vmatpush3.msra.mxu1 %v28_v17 }
  0x14   :  { %164 = vmatprep.subr.mxu0 %v43_v18  ;;  %193 = vmatprep.subr.mxu1 %v43_v18 }
  0x15   :  { %165 = vmatpush3.msra.mxu0 %v27_v19  ;;  %209 = vmatpush3.msra.mxu1 %v27_v19 }
  0x16   :  { %166 = vmatprep.subr.mxu0 %v42_v20  ;;  %194 = vmatprep.subr.mxu1 %v42_v20 }
  0x17   :  { %167 = vmatpush3.msra.mxu0 %v26_v21  ;;  %210 = vmatpush3.msra.mxu1 %v26_v21 }
  0x18   :  { %168 = vmatprep.subr.mxu0 %v41_v22  ;;  %195 = vmatprep.subr.mxu1 %v41_v22 }
  0x19   :  { %169 = vmatpush3.msra.mxu0 %v25_v23  ;;  %211 = vmatpush3.msra.mxu1 %v25_v23 }
  0x1a   :  { %170 = vmatprep.subr.mxu0 %v40_v24  ;;  %196 = vmatprep.subr.mxu1 %v40_v24 }
  0x1b   :  { %171 = vmatpush3.msra.mxu0 %v24_v25  ;;  %212 = vmatpush3.msra.mxu1 %v24_v25 }
  0x1c   :  { %172 = vmatprep.subr.mxu0 %v39_v26  ;;  %197 = vmatprep.subr.mxu1 %v39_v26 }
  0x1d   :  { %173 = vmatpush3.msra.mxu0 %v23_v27  ;;  %213 = vmatpush3.msra.mxu1 %v23_v27 }
  0x1e   :  { %174 = vmatprep.subr.mxu0 %v38_v28  ;;  %198 = vmatprep.subr.mxu1 %v38_v28 }
  0x1f   :  { %175 = vmatpush3.msra.mxu0 %v22_v29  ;;  %214 = vmatpush3.msra.mxu1 %v22_v29 }
  0x20   :  { %176 = vmatprep.subr.mxu0 %v37_v30  ;;  %199 = vmatprep.subr.mxu1 %v37_v30 }
  0x21   :  { %177 = vmatpush3.msra.mxu0 %v21_v31  ;;  %215 = vmatpush3.msra.mxu1 %v21_v31 }
  0x22   :  { %124 = vmatprep.mubr.f32.mxu0 %v18_v32  ;;  %129 = vmatprep.mubr.f32.mxu1 %v20_v33 }
  0x23   :  { %125 = vmatmul.mubr.f32.vlgmr.msra.gmra.mxu0 %v17_v34  ;;  %130 = vmatmul.mubr.f32.vlgmr.msra.gmra.mxu1 %v19_v35 }
  0xe3   :  { %v178_v36 = vpop.f32.mrf.mxu0  ;;  %v181_v37 = vpop.f32.mrf.mxu1 }
  0xe5   :  { %v179_v39 = vpop.f32.mrf.mxu0  ;;  %v182_v40 = vpop.f32.mrf.mxu1 }
  0xe6   :  { %v180_v41 = vadd.f32 %v179_v39, %v178_v36  ;;  %v183_v42 = vadd.f32 %v182_v40, %v181_v37 }
  0xe8   :  { %v127_v45 = vadd.f32 %v180_v41, %v145_v38  ;;  %v132_v46 = vadd.f32 %v183_v42, %v145_v38 }
  0xea   :  { %v137_v47 = vadd.f32 %v135_v43, %v127_v45  ;;  %v138_v48 = vadd.f32 %v136_v44, %v132_v46 }
  0xec   :  { %139 = vst [vmem:[%s368_s4] sm:$0xff] %v137_v47  ;;  %140 = vst [vmem:[%s368_s4 + $0x8] sm:$0xff] %v138_v48 }

// kernel: cross_transformer_avg_mod.36
= control target key start
LH: loop header
LB: loop body
LE: loop exit
PB: predicated region body
PF: predicated region fallthrough
CT: control target
= control target key end

     0   :  { %vm19_vm0 = vcmask 261120   ;;  %s135_s0 = inlined_call_operand.vmem [shape: f32[16,32], index: 0, kind: input, shape index: {}]   ;;  %s136_s1 = inlined_call_operand.vmem [shape: f32[1,32], index: 1, kind: input, shape index: {}]   ;;  %s137_s2 = inlined_call_operand.vmem [shape: f32[1,32], index: 2, kind: input, shape index: {}]   ;;  %s138_s3 = inlined_call_operand.vmem [shape: f32[16,32], index: 3, kind: input, shape index: {}]   ;;  %s139_s4 = inlined_call_operand.vmem [shape: f32[16,32], index: 4, kind: output, shape index: {}]  }
   0x1   :  { %v17_v0 = vld [vmem:[%s135_s0] sm:$0xff]  ;;  %v18_v1 = vld [vmem:[%s135_s0 + $0x8] sm:$0xff] }
   0x2   :  { %v20_v2 = vsel %vm19_vm0, %v17_v0, 0.0  ;;  %v23_v3 = vsel %vm19_vm0, %v18_v1, 0.0  ;;  %v74_v21 = vld [vmem:[%s136_s1] ss:$0 sm:$0xff]  ;;  %v65_v31 = vld [vmem:[%s138_s3 + $0x8] sm:$0xff] }
   0x3   :  { %21 = vadd.xlane.f32.xlu0 %v20_v2  ;;  %v75_v23 = vld [vmem:[%s137_s2] ss:$0 sm:$0xff] }
   0x4   :  { %v64_v26 = vld [vmem:[%s138_s3] sm:$0xff] }
   0x7   :  { %24 = vadd.xlane.f32.xlu0 %v23_v3 }
  0x8c   :  { %v22_v4 = vpop.xlane.xlu0 %21 }
  0x8d   :  { %v26_v5 = vmul.f32 0.03125, %v22_v4 }
  0x8f   :  { %v28_v6 = vsub.f32 %v17_v0, %v26_v5 }
  0x90   :  { %v25_v7 = vpop.xlane.xlu0 %24 }
  0x91   :  { %v27_v8 = vmul.f32 0.03125, %v25_v7  ;;  %v30_v9 = vmul.f32 %v28_v6, %v28_v6 }
  0x93   :  { %v29_v10 = vsub.f32 %v18_v1, %v27_v8  ;;  %v32_v11 = vsel %vm19_vm0, %v30_v9, 0.0 }
  0x94   :  { %33 = vadd.xlane.f32.xlu1 %v32_v11 }
  0x95   :  { %v31_v12 = vmul.f32 %v29_v10, %v29_v10 }
  0x97   :  { %v35_v13 = vsel %vm19_vm0, %v31_v12, 0.0 }
  0x98   :  { %36 = vadd.xlane.f32.xlu1 %v35_v13 }
 0x11d   :  { %v34_v14 = vpop.xlane.xlu1 %33 }
 0x11e   :  { %v38_v15 = vmul.f32 0.03125, %v34_v14 }
 0x120   :  { %v40_v16 = vadd.f32 1e-05, %v38_v15 }
 0x121   :  { %v37_v17 = vpop.xlane.xlu1 %36 }
 0x122   :  { %76 = vrsqrt.f32 %v40_v16  ;;  %v39_v18 = vmul.f32 0.03125, %v37_v17 }
 0x124   :  { %v41_v19 = vadd.f32 1e-05, %v39_v18 }
 0x126   :  { %78 = vrsqrt.f32 %v41_v19 }
 0x12f   :  { %v77_v20 = vpop.eup %76 }
 0x130   :  { %v44_v22 = vmul.f32 %v77_v20, %v28_v6 }
 0x132   :  { %v53_v24 = vmul.f32 %v74_v21, %v44_v22 }
 0x133   :  { %v79_v25 = vpop.eup %78 }
 0x134   :  { %v62_v27 = vadd.f32 %v75_v23, %v53_v24  ;;  %v45_v28 = vmul.f32 %v79_v25, %v29_v10 }
 0x136   :  { %v66_v29 = vadd.f32 %v64_v26, %v62_v27  ;;  %v54_v30 = vmul.f32 %v74_v21, %v45_v28 }
 0x138   :  { %68 = vst.msk [vmem:[%s139_s4] sm:$0xff] %vm19_vm0, %v66_v29  ;;  %v63_v32 = vadd.f32 %v75_v23, %v54_v30 }
 0x13a   :  { %v67_v33 = vadd.f32 %v65_v31, %v63_v32 }
 0x13c   :  { %69 = vst.msk [vmem:[%s139_s4 + $0x8] sm:$0xff] %vm19_vm0, %v67_v33 }

// kernel: cross_transformer_avg_mod.35
= control target key start
LH: loop header
LB: loop body
LE: loop exit
PB: predicated region body
PF: predicated region fallthrough
CT: control target
= control target key end

     0   :  { %vm34_vm0 = vcmask 523264   ;;  %s230_s1 = inlined_call_operand.vmem [shape: f32[64,128], index: 1, kind: input, shape index: {}]   ;;  %s231_s0 = inlined_call_operand.vmem [shape: f32[16,64], index: 0, kind: input, shape index: {}]   ;;  %s232_s2 = inlined_call_operand.vmem [shape: f32[1,128], index: 2, kind: input, shape index: {}]   ;;  %s233_s3 = inlined_call_operand.vmem [shape: f32[16,128], index: 3, kind: input, shape index: {}]   ;;  %s234_s4 = inlined_call_operand.vmem [shape: f32[16,128], index: 4, kind: output, shape index: {}]  }
   0x1   :  { %v26_v0 = vld [vmem:[%s230_s1 + $0x38] sm:$0xff]  ;;  %v25_v1 = vld [vmem:[%s230_s1 + $0x30] sm:$0xff]  ;;  %v24_v2 = vld [vmem:[%s230_s1 + $0x28] sm:$0xff] }
   0x2   :  { %139 = vmatprep.subr.mxu0 %v26_v0  ;;  %v17_v3 = vld [vmem:[%s231_s0] sm:$0xff]  ;;  %v22_v5 = vld [vmem:[%s230_s1 + $0x18] sm:$0xff]  ;;  %v21_v6 = vld [vmem:[%s230_s1 + $0x10] sm:$0xff] }
   0x3   :  { %140 = vmatpush3.msra.mxu0 %v26_v0  ;;  %155 = vmatprep.mubr.msk.f32.mxu0 %vm34_vm0, %v17_v3  ;;  %v23_v4 = vld [vmem:[%s230_s1 + $0x20] sm:$0xff]  ;;  %v20_v7 = vld [vmem:[%s230_s1 + $0x8] sm:$0xff] }
   0x4   :  { %141 = vmatprep.subr.mxu0 %v25_v1  ;;  %v19_v8 = vld [vmem:[%s230_s1] sm:$0xff]  ;;  %v18_v9 = vld [vmem:[%s231_s0 + $0x8] sm:$0xff] }
   0x5   :  { %142 = vmatpush3.msra.mxu0 %v25_v1  ;;  %v126_v10 = vld [vmem:[%s232_s2] ss:$0 sm:$0xff]  ;;  %v117_v12 = vld [vmem:[%s233_s3 + $0x8] sm:$0xff] }
   0x6   :  { %143 = vmatprep.subr.mxu0 %v24_v2  ;;  %v116_v15 = vld [vmem:[%s233_s3] sm:$0xff] }
   0x7   :  { %144 = vmatpush3.msra.mxu0 %v24_v2 }
   0x8   :  { %145 = vmatprep.subr.mxu0 %v23_v4 }
   0x9   :  { %146 = vmatpush3.msra.mxu0 %v23_v4 }
   0xa   :  { %147 = vmatprep.subr.mxu0 %v22_v5 }
   0xb   :  { %148 = vmatpush3.msra.mxu0 %v22_v5 }
   0xc   :  { %149 = vmatprep.subr.mxu0 %v21_v6 }
   0xd   :  { %150 = vmatpush3.msra.mxu0 %v21_v6 }
   0xe   :  { %151 = vmatprep.subr.mxu0 %v20_v7 }
   0xf   :  { %152 = vmatpush3.msra.mxu0 %v20_v7 }
  0x10   :  { %153 = vmatprep.subr.mxu0 %v19_v8 }
  0x11   :  { %154 = vmatpush3.msra.mxu0 %v19_v8 }
  0x12   :  { %156 = vmatmul.mubr.msk.f32.vlgmr.msra.gmra.mxu0 %vm34_vm0, %v18_v9 }
  0xd2   :  { %v157_v11 = vpop.f32.mrf.mxu0 }
  0xd3   :  { %v113_v13 = vadd.f32 %v157_v11, %v126_v10 }
  0xd4   :  { %v107_v14 = vpop.f32.mrf.mxu0 }
  0xd5   :  { %v119_v16 = vadd.f32 %v117_v12, %v113_v13  ;;  %v108_v17 = vadd.f32 %v126_v10, %v107_v14 }
  0xd7   :  { %121 = vst [vmem:[%s234_s4 + $0x8] sm:$0xff] %v119_v16  ;;  %v118_v18 = vadd.f32 %v116_v15, %v108_v17 }
  0xd9   :  { %120 = vst [vmem:[%s234_s4] sm:$0xff] %v118_v18 }

// kernel: cross_transformer_avg_mod.34
= control target key start
LH: loop header
LB: loop body
LE: loop exit
PB: predicated region body
PF: predicated region fallthrough
CT: control target
= control target key end

     0   :  { %vm22_vm0 = vcmask 261120   ;;  %s322_s0 = inlined_call_operand.vmem [shape: f32[16,32], index: 0, kind: input, shape index: {}]   ;;  %s323_s3 = inlined_call_operand.vmem [shape: f32[32,128], index: 3, kind: input, shape index: {}]   ;;  %s324_s1 = inlined_call_operand.vmem [shape: f32[1,32], index: 1, kind: input, shape index: {}]   ;;  %s325_s2 = inlined_call_operand.vmem [shape: f32[1,32], index: 2, kind: input, shape index: {}]   ;;  %s326_s4 = inlined_call_operand.vmem [shape: f32[1,128], index: 4, kind: input, shape index: {}]   ;;  %s327_s5 = inlined_call_operand.vmem [shape: f32[16,128], index: 5, kind: output, shape index: {}]  }
   0x1   :  { %v20_v0 = vld [vmem:[%s322_s0] sm:$0xff]  ;;  %v21_v1 = vld [vmem:[%s322_s0 + $0x8] sm:$0xff]  ;;  %v70_v14 = vld [vmem:[%s323_s3 + $0x18] sm:$0xff] }
   0x2   :  { %v23_v2 = vsel %vm22_vm0, %v20_v0, 0.0  ;;  %v26_v3 = vsel %vm22_vm0, %v21_v1, 0.0  ;;  %v69_v15 = vld [vmem:[%s323_s3 + $0x10] sm:$0xff]  ;;  %230 = vmatprep.subr.mxu0 %v70_v14  ;;  %v68_v16 = vld [vmem:[%s323_s3 + $0x8] sm:$0xff]  ;;  %v67_v17 = vld [vmem:[%s323_s3] sm:$0xff] }
   0x3   :  { %24 = vadd.xlane.f32.xlu0 %v23_v2  ;;  %231 = vmatpush3.msra.mxu0 %v70_v14  ;;  %v219_v25 = vld [vmem:[%s324_s1] ss:$0 sm:$0xff] }
   0x4   :  { %232 = vmatprep.subr.mxu0 %v69_v15  ;;  %v220_v27 = vld [vmem:[%s325_s2] ss:$0 sm:$0xff] }
   0x5   :  { %233 = vmatpush3.msra.mxu0 %v69_v15  ;;  %v221_v34 = vld [vmem:[%s326_s4] ss:$0 sm:$0xff] }
   0x6   :  { %234 = vmatprep.subr.mxu0 %v68_v16 }
   0x7   :  { %27 = vadd.xlane.f32.xlu0 %v26_v3  ;;  %235 = vmatpush3.msra.mxu0 %v68_v16 }
   0x8   :  { %236 = vmatprep.subr.mxu0 %v67_v17 }
   0x9   :  { %237 = vmatpush3.msra.mxu0 %v67_v17 }
  0x8c   :  { %v25_v4 = vpop.xlane.xlu0 %24 }
  0x8d   :  { %v29_v5 = vmul.f32 0.03125, %v25_v4 }
  0x8f   :  { %v31_v6 = vsub.f32 %v20_v0, %v29_v5 }
  0x90   :  { %v28_v7 = vpop.xlane.xlu0 %27 }
  0x91   :  { %v30_v8 = vmul.f32 0.03125, %v28_v7  ;;  %v33_v9 = vmul.f32 %v31_v6, %v31_v6 }
  0x93   :  { %v32_v10 = vsub.f32 %v21_v1, %v30_v8  ;;  %v35_v11 = vsel %vm22_vm0, %v33_v9, 0.0 }
  0x94   :  { %36 = vadd.xlane.f32.xlu1 %v35_v11 }
  0x95   :  { %v34_v12 = vmul.f32 %v32_v10, %v32_v10 }
  0x97   :  { %v38_v13 = vsel %vm22_vm0, %v34_v12, 0.0 }
  0x98   :  { %39 = vadd.xlane.f32.xlu1 %v38_v13 }
 0x11d   :  { %v37_v18 = vpop.xlane.xlu1 %36 }
 0x11e   :  { %v41_v19 = vmul.f32 0.03125, %v37_v18 }
 0x120   :  { %v43_v20 = vadd.f32 1e-05, %v41_v19 }
 0x121   :  { %v40_v21 = vpop.xlane.xlu1 %39 }
 0x122   :  { %241 = vrsqrt.f32 %v43_v20  ;;  %v42_v22 = vmul.f32 0.03125, %v40_v21 }
 0x124   :  { %v44_v23 = vadd.f32 1e-05, %v42_v22 }
 0x126   :  { %243 = vrsqrt.f32 %v44_v23 }
 0x12f   :  { %v242_v24 = vpop.eup %241 }
 0x130   :  { %v47_v26 = vmul.f32 %v242_v24, %v31_v6 }
 0x132   :  { %v56_v28 = vmul.f32 %v219_v25, %v47_v26 }
 0x133   :  { %v244_v29 = vpop.eup %243 }
 0x134   :  { %v48_v30 = vmul.f32 %v244_v29, %v32_v10  ;;  %v65_v31 = vadd.f32 %v220_v27, %v56_v28 }
 0x136   :  { %v57_v32 = vmul.f32 %v219_v25, %v48_v30  ;;  %238 = vmatprep.mubr.msk.f32.mxu0 %vm22_vm0, %v65_v31 }
 0x138   :  { %v66_v33 = vadd.f32 %v220_v27, %v57_v32 }
 0x13a   :  { %239 = vmatmul.mubr.msk.f32.vlgmr.msra.gmra.mxu0 %vm22_vm0, %v66_v33 }
 0x1fa   :  { %v240_v35 = vpop.f32.mrf.mxu0 }
 0x1fb   :  { %v156_v36 = vadd.f32 %v240_v35, %v221_v34 }
 0x1fc   :  { %v150_v37 = vpop.f32.mrf.mxu0 }
 0x1fd   :  { %v162_v38 = vmul.f32 0.70710677, %v156_v36  ;;  %v151_v39 = vadd.f32 %v221_v34, %v150_v37  ;;  %v160_v17 = vmul.f32 0.5, %v156_v36 }
 0x1ff   :  { %v164_v40 = vand.u32 2147483647, %v162_v38  ;;  %v161_v41 = vmul.f32 0.70710677, %v151_v39  ;;  %vm204_vm1 = vcmp.lt.f32.partialorder %v162_v38, 0.0  ;;  %v159_v22 = vmul.f32 0.5, %v151_v39 }
 0x201   :  { %v166_v42 = vmul.f32 0.3275911, %v164_v40  ;;  %v163_v43 = vand.u32 2147483647, %v161_v41  ;;  %v192_v47 = vmul.f32 %v164_v40, %v164_v40  ;;  %vm203_vm2 = vcmp.lt.f32.partialorder %v161_v41, 0.0 }
 0x203   :  { %v168_v44 = vadd.f32 1.0, %v166_v42  ;;  %v165_v45 = vmul.f32 0.3275911, %v163_v43  ;;  %v191_v48 = vmul.f32 %v163_v43, %v163_v43  ;;  %v194_v49 = vsub.f32 0.0, %v192_v47 }
 0x205   :  { %245 = vrcp.f32 %v168_v44  ;;  %v167_v46 = vadd.f32 1.0, %v165_v45  ;;  %v193_v51 = vsub.f32 0.0, %v191_v48  ;;  %v197_v53 = vmul.f32 1.442695, %v194_v49 }
 0x207   :  { %247 = vrcp.f32 %v167_v46  ;;  %v195_v57 = vmul.f32 1.442695, %v193_v51 }
 0x208   :  { %249 = vpow2.f32 %v197_v53 }
 0x209   :  { %251 = vpow2.f32 %v195_v57 }
 0x212   :  { %v246_v50 = vpop.eup %245 }
 0x213   :  { %v174_v52 = vmul.f32 1.0614054, %v246_v50 }
 0x214   :  { %v248_v54 = vpop.eup %247 }
 0x215   :  { %v176_v55 = vadd.f32 -1.4531521, %v174_v52  ;;  %v173_v56 = vmul.f32 1.0614054, %v248_v54  ;;  %v250_v7 = vpop.eup %249 }
 0x216   :  { %v252_v11 = vpop.eup %251 }
 0x217   :  { %v178_v58 = vmul.f32 %v246_v50, %v176_v55  ;;  %v175_v59 = vadd.f32 -1.4531521, %v173_v56 }
 0x219   :  { %v180_v60 = vadd.f32 1.4214138, %v178_v58  ;;  %v177_v61 = vmul.f32 %v248_v54, %v175_v59 }
 0x21b   :  { %v182_v62 = vmul.f32 %v246_v50, %v180_v60  ;;  %v179_v63 = vadd.f32 1.4214138, %v177_v61 }
 0x21d   :  { %v184_v0 = vadd.f32 -0.28449672, %v182_v62  ;;  %v181_v1 = vmul.f32 %v248_v54, %v179_v63 }
 0x21f   :  { %v186_v2 = vmul.f32 %v246_v50, %v184_v0  ;;  %v183_v3 = vadd.f32 -0.28449672, %v181_v1 }
 0x221   :  { %v188_v4 = vadd.f32 0.2548296, %v186_v2  ;;  %v185_v5 = vmul.f32 %v248_v54, %v183_v3 }
 0x223   :  { %v190_v6 = vmul.f32 %v246_v50, %v188_v4  ;;  %v187_v8 = vadd.f32 0.2548296, %v185_v5 }
 0x225   :  { %v200_v9 = vmul.f32 %v250_v7, %v190_v6  ;;  %v189_v10 = vmul.f32 %v248_v54, %v187_v8 }
 0x227   :  { %v202_v12 = vsub.f32 1.0, %v200_v9  ;;  %v199_v13 = vmul.f32 %v252_v11, %v189_v10 }
 0x229   :  { %v206_v14 = vsub.f32 0.0, %v202_v12  ;;  %v201_v15 = vsub.f32 1.0, %v199_v13 }
 0x22b   :  { %v208_v16 = vsel %vm204_vm1, %v206_v14, %v202_v12  ;;  %v205_v19 = vsub.f32 0.0, %v201_v15 }
 0x22c   :  { %v210_v18 = vadd.f32 1.0, %v208_v16 }
 0x22d   :  { %v207_v21 = vsel %vm203_vm2, %v205_v19, %v201_v15 }
 0x22e   :  { %v212_v20 = vmul.f32 %v210_v18, %v160_v17  ;;  %v209_v23 = vadd.f32 1.0, %v207_v21 }
 0x230   :  { %214 = vst [vmem:[%s327_s5 + $0x8] sm:$0xff] %v212_v20  ;;  %v211_v24 = vmul.f32 %v209_v23, %v159_v22 }
 0x232   :  { %213 = vst [vmem:[%s327_s5] sm:$0xff] %v211_v24 }

// kernel: cross_transformer_avg_mod.38
= control target key start
LH: loop header
LB: loop body
LE: loop exit
PB: predicated region body
PF: predicated region fallthrough
CT: control target
= control target key end

     0   :  { %v207_v3 = vmov 0.0   ;;  %vm29_vm0 = vcmask 261120   ;;  %s301_s1 = inlined_call_operand.vmem [shape: f32[32,512], index: 1, kind: input, shape index: {}]   ;;  %s302_s0 = inlined_call_operand.vmem [shape: f32[16,32], index: 0, kind: input, shape index: {}]   ;;  %s303_s2 = inlined_call_operand.vmem [shape: f32[16,512], index: 2, kind: output, shape index: {}]  }
   0x1   :  { %v26_v0 = vld [vmem:[%s301_s1 + $0x68] sm:$0xff]  ;;  %v28_v1 = vld [vmem:[%s301_s1 + $0x78] sm:$0xff]  ;;  %v25_v2 = vld [vmem:[%s301_s1 + $0x60] sm:$0xff]  ;;  %100 = vmatprep.mubr.f32.mxu0 %v207_v3  ;;  %177 = vmatprep.mubr.f32.mxu1 %v207_v3 }
   0x2   :  { %60 = vmatprep.subr.mxu0 %v26_v0  ;;  %137 = vmatprep.subr.mxu1 %v28_v1  ;;  %v27_v4 = vld [vmem:[%s301_s1 + $0x70] sm:$0xff]  ;;  %v22_v5 = vld [vmem:[%s301_s1 + $0x48] sm:$0xff]  ;;  %v24_v6 = vld [vmem:[%s301_s1 + $0x58] sm:$0xff] }
   0x3   :  { %61 = vmatpush1.msra.mxu0 %v25_v2  ;;  %138 = vmatpush1.msra.mxu1 %v27_v4  ;;  %v21_v7 = vld [vmem:[%s301_s1 + $0x40] sm:$0xff]  ;;  %v23_v8 = vld [vmem:[%s301_s1 + $0x50] sm:$0xff]  ;;  %v18_v9 = vld [vmem:[%s301_s1 + $0x28] sm:$0xff] }
   0x4   :  { %62 = vmatprep.subr.mxu0 %v22_v5  ;;  %139 = vmatprep.subr.mxu1 %v24_v6  ;;  %v20_v10 = vld [vmem:[%s301_s1 + $0x38] sm:$0xff]  ;;  %v17_v11 = vld [vmem:[%s301_s1 + $0x20] sm:$0xff]  ;;  %v19_v12 = vld [vmem:[%s301_s1 + $0x30] sm:$0xff] }
   0x5   :  { %63 = vmatpush1.msra.mxu0 %v21_v7  ;;  %140 = vmatpush1.msra.mxu1 %v23_v8  ;;  %v14_v13 = vld [vmem:[%s301_s1 + $0x8] sm:$0xff]  ;;  %v16_v14 = vld [vmem:[%s301_s1 + $0x18] sm:$0xff]  ;;  %v13_v15 = vld [vmem:[%s301_s1] sm:$0xff] }
   0x6   :  { %64 = vmatprep.subr.mxu0 %v18_v9  ;;  %141 = vmatprep.subr.mxu1 %v20_v10  ;;  %v15_v16 = vld [vmem:[%s301_s1 + $0x10] sm:$0xff]  ;;  %v11_v17 = vld [vmem:[%s302_s0] sm:$0xff]  ;;  %v12_v18 = vld [vmem:[%s302_s0 + $0x8] sm:$0xff] }
   0x7   :  { %65 = vmatpush1.msra.mxu0 %v17_v11  ;;  %142 = vmatpush1.msra.mxu1 %v19_v12 }
   0x8   :  { %66 = vmatprep.subr.mxu0 %v14_v13  ;;  %143 = vmatprep.subr.mxu1 %v16_v14 }
   0x9   :  { %67 = vmatpush1.msra.mxu0 %v13_v15  ;;  %144 = vmatpush1.msra.mxu1 %v15_v16 }
   0xa   :  { %202 = vmatmul.mubr.msk.f32.vlgmr.msra.gmra.mxu0 %vm29_vm0, %v11_v17  ;;  %204 = vmatmul.mubr.msk.f32.vlgmr.msra.gmra.mxu1 %vm29_vm0, %v11_v17 }
   0xb   :  { %106 = vmatprep.mubr.f32.mxu0 %v207_v3  ;;  %183 = vmatprep.mubr.f32.mxu1 %v207_v3 }
   0xe   :  { %203 = vmatmul.mubr.msk.f32.gmra.mxu0 %vm29_vm0, %v12_v18  ;;  %205 = vmatmul.mubr.msk.f32.gmra.mxu1 %vm29_vm0, %v12_v18 }
  0xca   :  { %v102_v19 = vpop.f32.mrf.mxu0  ;;  %v179_v20 = vpop.f32.mrf.mxu1 }
  0xcb   :  { %190 = vst [vmem:[%s303_s2] sm:$0xff] %v102_v19  ;;  %192 = vst [vmem:[%s303_s2 + $0x10] sm:$0xff] %v179_v20 }
  0xcc   :  { %v104_v21 = vpop.f32.mrf.mxu0  ;;  %v181_v22 = vpop.f32.mrf.mxu1 }
  0xcd   :  { %191 = vst [vmem:[%s303_s2 + $0x8] sm:$0xff] %v104_v21  ;;  %193 = vst [vmem:[%s303_s2 + $0x18] sm:$0xff] %v181_v22 }
  0xce   :  { %v108_v23 = vpop.f32.mrf.mxu0  ;;  %v185_v24 = vpop.f32.mrf.mxu1 }
  0xcf   :  { %194 = vst [vmem:[%s303_s2 + $0x20] sm:$0xff] %v108_v23  ;;  %196 = vst [vmem:[%s303_s2 + $0x30] sm:$0xff] %v185_v24 }
  0xd0   :  { %v110_v25 = vpop.f32.mrf.mxu0  ;;  %v187_v26 = vpop.f32.mrf.mxu1 }
  0xd1   :  { %195 = vst [vmem:[%s303_s2 + $0x28] sm:$0xff] %v110_v25  ;;  %197 = vst [vmem:[%s303_s2 + $0x38] sm:$0xff] %v187_v26 }

// kernel: cross_transformer_avg_mod.59
= control target key start
LH: loop header
LB: loop body
LE: loop exit
PB: predicated region body
PF: predicated region fallthrough
CT: control target
= control target key end

     0   :  { %s277_s9 = smov 0   ;;  %s297_s0 = inlined_call_operand.vmem [shape: f32[2,8,32], index: 0, kind: input, shape index: {}]   ;;  %s298_s1 = inlined_call_operand.vmem [shape: f32[2,1,32], index: 1, kind: output, shape index: {0}]   ;;  %s299_s2 = inlined_call_operand.vmem [shape: f32[2,1,32], index: 2, kind: output, shape index: {1}]  }
   0x1 LB: > { %s238_s10 = sadd.s32 4294967295, %s260_s9   ;;  %p242_p0 = scmp.ge.s32.totalorder %s260_s9, 1  ;;  %s260_s9 = sphi %s277_s9, %s13_s9  }
   0x2   : > { %p114_p1 = scmp.lt.s32.totalorder %s260_s9, 3 }
   0x4   : > { %p115_p2 = pnand %p242_p0, %p114_p1 }
   0x5   : > { %p136_p3 = scmp.lt.s32.totalorder (!%p115_p2), %s238_s10, 1 }
   0x6   : > { %118 = sbr.rel (%p115_p2) target bundleno = 31 (0x1f), region = 24 }
   0xb   : > { %s301_s10 = smov (!%p136_p3, %s238_s10), 1  ;;  %vm147_vm0 = vcmask 261120   ;;  %vm156_vm1 = vcmask 253952  }
   0xc   : > { %s243_s11 = sshll.u32 %s301_s10, 3  ;;  %s145_s17 = scalar_lea.vmem %s299_s2, %s301_s10 }
   0xd   : > { %s139_s14 = scalar_lea.vmem %s297_s0, %s243_s11  ;;  %s142_s20 = scalar_lea.vmem %s298_s1, %s301_s10 }
   0xe   : > { %v146_v0 = vld [vmem:[%s139_s14] sm:$0xff] }
   0xf   : > { %v148_v1 = vsel %vm147_vm0, %v146_v0, 0.0  ;;  %v158_v2 = vsel %vm147_vm0, %v146_v0, -inf }
  0x10   : > { %v149_v3 = vrot.slane %v148_v1, 4  ;;  %v159_v4 = vrot.slane %v158_v2, 4 }
  0x12   : > { %v150_v5 = vadd.f32 %v149_v3, %v148_v1  ;;  %v160_v6 = vmax.f32 %v158_v2, %v159_v4 }
  0x14   : > { %v151_v7 = vrot.slane %v150_v5, 2  ;;  %v161_v8 = vrot.slane %v160_v6, 2 }
  0x16   : > { %v152_v9 = vadd.f32 %v151_v7, %v150_v5  ;;  %v162_v10 = vmax.f32 %v160_v6, %v161_v8 }
  0x18   : > { %v153_v11 = vrot.slane %v152_v9, 1  ;;  %v163_v12 = vrot.slane %v162_v10, 1 }
  0x1a   : > { %v154_v13 = vadd.f32 %v153_v11, %v152_v9  ;;  %v164_v14 = vmax.f32 %v162_v10, %v163_v12 }
  0x1c   : > { %v155_v15 = vmul.f32 0.125, %v154_v13  ;;  %165 = vst.msk [vmem:[%s145_s17] sm:$0x1] %vm156_vm1, %v164_v14 }
  0x1e   : > { %157 = vst.msk [vmem:[%s142_s20] sm:$0x1] %vm156_vm1, %v155_v15 }
  0x1f PF: > { %s13_s9 = sadd.s32 1, %s260_s9  }
  0x20   : > { %p10_p4 = scmp.ge.s32.totalorder %s13_s9, 4  }
  0x22   :  { %12 = sbr.rel (!%p10_p4) target bundleno = 1 (0x1), region = 66 }

</bundles_post_ra>
